<compile_context>
chip_gen: v5e
topology: v5e:2x2
jax: 0.10.0
libtpu: 0.0.40
codegen_flags: <defaults>
</compile_context>

<pallas_src>
import jax
import jax.numpy as jnp
import numpy as np
from jax.experimental import pallas as pl
from jax.experimental.pallas import tpu as pltpu

_LANE = 128
_SUB = 8


def _round_up(v, m):
    return ((v + m - 1) // m) * m


def _vmem_capacity_bytes():
    """Trace-time VMEM capacity; conservative fallback = v7x per-TC (64 MiB)."""
    try:
        return int(pltpu.get_tpu_info().vmem_capacity_bytes)
    except Exception:
        return 64 << 20


def _sigmoid(x):
    # One EUP tanh per gate (avoids an exp+divide path); exact same function.
    return 0.5 * (jnp.tanh(0.5 * x) + 1.0)


def lstm_regressor(x, w_ih, w_hh, b_ih, b_hh, w_lin, b_lin,
                   compute_dtype=jnp.float32):
    """x: (B, T, D) float32.  Weights in PyTorch layout:
       w_ih (4H, D), w_hh (4H, H), b_ih (4H,), b_hh (4H,), w_lin (1, H), b_lin (1,).
       compute_dtype: dtype of MXU matmul operands and the gate-precompute
       scratch (use jnp.bfloat16 on v6e/v7x; f32 matches PyTorch tightly)."""
    B, T, D = x.shape
    H = w_hh.shape[1]

    h_pad = _round_up(H, _LANE)          # lane-aligned hidden dim
    b_pad = _round_up(B, _SUB)           # sublane-aligned batch

    comp_size = np.dtype(compute_dtype).itemsize
    gp_dtype = compute_dtype             # gate-precompute scratch dtype
    gp_size = np.dtype(gp_dtype).itemsize

    # ---- time-block size from the VMEM budget (not a fixed cap) ----
    capacity = _vmem_capacity_bytes()
    usable = capacity // 2               # headroom for compiler internal scratch
    fixed = (2 * (D * 4 * h_pad + h_pad * 4 * h_pad) * comp_size   # W_ih^T, W_hh^T (x2 buffers)
             + 2 * _SUB * 4 * h_pad * 4                            # bias tile (x2 buffers)
             + 2 * b_pad * h_pad * 4                               # h/c scratch
             + 2 * b_pad * h_pad * 4)                              # output block (x2 buffers)
    per_t = (b_pad * 4 * h_pad * gp_size          # gate-precompute rows
             + 2 * b_pad * D * comp_size)         # x block (x2 buffers)
    max_t = max(1, (usable - fixed) // per_t)
    t_blk = int(max(1, min(T, max_t, 512)))
    n_blk = -(-T // t_blk)               # cdiv; awkward T handled by masking
    t_pad = n_blk * t_blk
    unroll_amt = True if t_blk <= 64 else 8

    needed = fixed + t_blk * per_t
    vmem_limit = int(min(capacity - (4 << 20), max(needed + (8 << 20), 32 << 20)))
    vmem_limit = max(vmem_limit, needed + (2 << 20))

    # ---- weight prep: PyTorch layout -> right-multiply form, gate-padded ----
    def pad_gate_cols(w):                             # (..., 4H) -> (..., 4*h_pad)
        w4 = w.reshape(w.shape[:-1] + (4, H))
        w4 = jnp.pad(w4, [(0, 0)] * (w4.ndim - 1) + [(0, h_pad - H)])
        return w4.reshape(w.shape[:-1] + (4 * h_pad,))

    w_ih_t = pad_gate_cols(jnp.transpose(w_ih)).astype(compute_dtype)      # (D, 4*h_pad)
    w_hh_t = pad_gate_cols(jnp.transpose(w_hh))                            # (H, 4*h_pad)
    w_hh_t = jnp.pad(w_hh_t, ((0, h_pad - H), (0, 0))).astype(compute_dtype)  # (h_pad, 4*h_pad)
    bias = pad_gate_cols((b_ih + b_hh).reshape(1, 4 * H)).astype(jnp.float32)  # (1, 4*h_pad)

    # ---- activations: (B,T,D) -> (t_pad, b_pad, D) -> (t_pad*b_pad, D) ----
    x_tbd = jnp.transpose(x, (1, 0, 2))
    x_tbd = jnp.pad(x_tbd, ((0, t_pad - T), (0, b_pad - B), (0, 0)))
    x2d = x_tbd.reshape(t_pad * b_pad, D).astype(compute_dtype)

    def kernel(x_ref, w_ih_ref, w_hh_ref, b_ref, h_out_ref, gp_scr, h_scr, c_scr):
        tb = pl.program_id(0)

        @pl.when(tb == 0)
        def _():
            h_scr[...] = jnp.zeros_like(h_scr)
            c_scr[...] = jnp.zeros_like(c_scr)

        # Phase 1: input projection + bias for the whole time block,
        # one big MXU matmul: (t_blk*b_pad, D) @ (D, 4*h_pad).
        gp = (jnp.dot(x_ref[...], w_ih_ref[...],
                      preferred_element_type=jnp.float32) + b_ref[...])
        gp_scr[...] = gp.astype(gp_dtype)

        # Phase 2: serial recurrence -- only h @ W_hh^T on the critical path.
        # NOTE: w_hh_ref is indexed *inside* the loop (no whole-weight vreg
        # hoist spanning the loop -> no spills around the serial chain).
        def step(t, carry):
            h, c = carry
            row = pl.multiple_of(t * b_pad, _SUB)
            g = (gp_scr[pl.ds(row, b_pad), :].astype(jnp.float32)
                 + jnp.dot(h.astype(compute_dtype), w_hh_ref[...],
                           preferred_element_type=jnp.float32))
            # lane-aligned gate views (h_pad is a multiple of 128)
            i_g = _sigmoid(g[:, 0 * h_pad:1 * h_pad])
            f_g = _sigmoid(g[:, 1 * h_pad:2 * h_pad])
            g_g = jnp.tanh(g[:, 2 * h_pad:3 * h_pad])
            o_g = _sigmoid(g[:, 3 * h_pad:4 * h_pad])
            c_new = f_g * c + i_g * g_g           # f32 elementwise state update
            h_new = o_g * jnp.tanh(c_new)
            if t_pad != T:                        # mask padded tail timesteps
                valid = (tb * t_blk + t) < T
                h_new = jnp.where(valid, h_new, h)
                c_new = jnp.where(valid, c_new, c)
            return h_new, c_new

        h, c = jax.lax.fori_loop(0, t_blk, step,
                                 (h_scr[...], c_scr[...]),
                                 unroll=unroll_amt)
        h_scr[...] = h
        c_scr[...] = c

        @pl.when(tb == pl.num_programs(0) - 1)
        def _():
            # Lane-dense output: final hidden state; the (H->1) head is done
            # in the wrapper (avoids a last-dim-1 masked store in the kernel).
            h_out_ref[...] = h

    h_final = pl.pallas_call(
        kernel,
        out_shape=jax.ShapeDtypeStruct((b_pad, h_pad), jnp.float32),
        grid_spec=pltpu.PrefetchScalarGridSpec(
            num_scalar_prefetch=0,
            grid=(n_blk,),
            in_specs=[
                pl.BlockSpec((t_blk * b_pad, D), lambda tb: (tb, 0)),   # x block
                pl.BlockSpec((D, 4 * h_pad), lambda tb: (0, 0)),        # W_ih^T
                pl.BlockSpec((h_pad, 4 * h_pad), lambda tb: (0, 0)),    # W_hh^T
                pl.BlockSpec((1, 4 * h_pad), lambda tb: (0, 0)),        # bias
            ],
            out_specs=pl.BlockSpec((b_pad, h_pad), lambda tb: (0, 0)),
            scratch_shapes=[
                pltpu.VMEM((t_blk * b_pad, 4 * h_pad), gp_dtype),       # gate precompute
                pltpu.VMEM((b_pad, h_pad), jnp.float32),                # h state
                pltpu.VMEM((b_pad, h_pad), jnp.float32),                # c state
            ],
        ),
        compiler_params=pltpu.CompilerParams(
            dimension_semantics=("arbitrary",),     # recurrent time-block axis
            vmem_limit_bytes=vmem_limit),
    )(x2d, w_ih_t, w_hh_t, bias)

    # Linear head on the last hidden state, in the XLA wrapper.
    h_b = h_final[:B, :H]
    return h_b @ w_lin.astype(jnp.float32).T + b_lin.astype(jnp.float32).reshape(1)


def _reference(x, w_ih, w_hh, b_ih, b_hh, w_lin, b_lin):
    """Pure-JAX reference with PyTorch LSTM semantics."""
    B, T, D = x.shape
    H = w_hh.shape[1]
    h = jnp.zeros((B, H), jnp.float32)
    c = jnp.zeros((B, H), jnp.float32)
    for t in range(T):
        g = x[:, t, :] @ w_ih.T + b_ih + h @ w_hh.T + b_hh
        i = jax.nn.sigmoid(g[:, 0 * H:1 * H])
        f = jax.nn.sigmoid(g[:, 1 * H:2 * H])
        gg = jnp.tanh(g[:, 2 * H:3 * H])
        o = jax.nn.sigmoid(g[:, 3 * H:4 * H])
        c = f * c + i * gg
        h = o * jnp.tanh(c)
    return h @ w_lin.T + b_lin


if __name__ == "__main__":
    B, T, D, H = 2, 8, 16, 32   # batch, seq, input_size, hidden_size

    key = jax.random.PRNGKey(0)
    ks = jax.random.split(key, 7)
    s = 1.0 / np.sqrt(H)        # PyTorch default init scale
    x = jax.random.normal(ks[0], (B, T, D), dtype=jnp.float32)
    w_ih = jax.random.uniform(ks[1], (4 * H, D), jnp.float32, -s, s)
    w_hh = jax.random.uniform(ks[2], (4 * H, H), jnp.float32, -s, s)
    b_ih = jax.random.uniform(ks[3], (4 * H,), jnp.float32, -s, s)
    b_hh = jax.random.uniform(ks[4], (4 * H,), jnp.float32, -s, s)
    w_lin = jax.random.uniform(ks[5], (1, H), jnp.float32, -s, s)
    b_lin = jax.random.uniform(ks[6], (1,), jnp.float32, -s, s)

    y_ref = _reference(x, w_ih, w_hh, b_ih, b_hh, w_lin, b_lin)

    # f32 matmul operands: exact parity with the PyTorch reference.
    y = lstm_regressor(x, w_ih, w_hh, b_ih, b_hh, w_lin, b_lin,
                       compute_dtype=jnp.float32)
    y = jax.block_until_ready(y)
    assert y.shape == (B, 1), y.shape
    np.testing.assert_allclose(np.asarray(y), np.asarray(y_ref),
                               rtol=2e-3, atol=2e-3)

    # bf16 matmul operands (v6e/v7x fast path); recurrent bf16 rounding means
    # a looser tolerance vs the f32 reference.
    y_bf = lstm_regressor(x, w_ih, w_hh, b_ih, b_hh, w_lin, b_lin,
                          compute_dtype=jnp.bfloat16)
    y_bf = jax.block_until_ready(y_bf)
    np.testing.assert_allclose(np.asarray(y_bf), np.asarray(y_ref),
                               rtol=2e-2, atol=2e-2)

    print("KERNEL_OK")
</pallas_src>

<mosaic_0001>
module attributes {stable_mosaic.version = 11 : i64} {
  func.func @kernel(%arg0: i32, %arg1: memref<64x16xf32, #tpu.memory_space<vmem>>, %arg2: memref<16x512xf32, #tpu.memory_space<vmem>>, %arg3: memref<128x512xf32, #tpu.memory_space<vmem>>, %arg4: memref<1x512xf32, #tpu.memory_space<vmem>>, %arg5: memref<8x128xf32, #tpu.memory_space<vmem>>, %arg6: memref<64x512xf32, #tpu.memory_space<vmem>>, %arg7: memref<8x128xf32, #tpu.memory_space<vmem>>, %arg8: memref<8x128xf32, #tpu.memory_space<vmem>>) attributes {dimension_semantics = [#tpu.dimension_semantics<arbitrary>], iteration_bounds = array<i64: 1>, scalar_prefetch = 0 : i64, scratch_operands = 3 : i64, tpu.core_type = #tpu.core_type<tc>, window_params = [{transform_indices = @transform_0, window_bounds = array<i64: 64, 16>}, {pipeline_mode = #tpu.pipeline_mode<synchronous>, transform_indices = @transform_1, window_bounds = array<i64: 16, 512>}, {pipeline_mode = #tpu.pipeline_mode<synchronous>, transform_indices = @transform_2, window_bounds = array<i64: 128, 512>}, {pipeline_mode = #tpu.pipeline_mode<synchronous>, transform_indices = @transform_3, window_bounds = array<i64: 1, 512>}, {pipeline_mode = #tpu.pipeline_mode<synchronous>, transform_indices = @transform_4, window_bounds = array<i64: 8, 128>}]} {
    %c0_i32 = arith.constant 0 : i32
    %0 = arith.cmpi eq, %arg0, %c0_i32 : i32
    %1 = arith.extui %0 : i1 to i32
    %c0_i32_0 = arith.constant 0 : i32
    %2 = arith.cmpi ne, %1, %c0_i32_0 : i32
    scf.if %2 {
      %cst_131 = arith.constant 0.000000e+00 : f32
      %321 = vector.broadcast %cst_131 : f32 to vector<8x128xf32>
      %c0_132 = arith.constant 0 : index
      %c0_133 = arith.constant 0 : index
      %322 = vector.load %arg7[%c0_132, %c0_133] : memref<8x128xf32, #tpu.memory_space<vmem>>, vector<8x128xf32>
      tpu.vector_store %arg7[%c0_132, %c0_133], %321 {strides = array<i32>} : memref<8x128xf32, #tpu.memory_space<vmem>>, vector<8x128xf32>,
      %cst_134 = arith.constant 0.000000e+00 : f32
      %323 = vector.broadcast %cst_134 : f32 to vector<8x128xf32>
      %c0_135 = arith.constant 0 : index
      %c0_136 = arith.constant 0 : index
      %324 = vector.load %arg8[%c0_135, %c0_136] : memref<8x128xf32, #tpu.memory_space<vmem>>, vector<8x128xf32>
      tpu.vector_store %arg8[%c0_135, %c0_136], %323 {strides = array<i32>} : memref<8x128xf32, #tpu.memory_space<vmem>>, vector<8x128xf32>,
    } else {
    }
    %c0 = arith.constant 0 : index
    %c0_1 = arith.constant 0 : index
    %3 = vector.load %arg1[%c0, %c0_1] : memref<64x16xf32, #tpu.memory_space<vmem>>, vector<64x16xf32>
    %c0_2 = arith.constant 0 : index
    %c0_3 = arith.constant 0 : index
    %4 = vector.load %arg2[%c0_2, %c0_3] : memref<16x512xf32, #tpu.memory_space<vmem>>, vector<16x512xf32>
    %cst = arith.constant dense<0.000000e+00> : vector<64x512xf32>
    %5 = tpu.matmul %3, %4, %cst {dimension_numbers = #tpu.dot_dimension_numbers<[1], [0], [0], [1], [0, 0, 1, 1], [], []>} : vector<64x16xf32>, vector<16x512xf32>, vector<64x512xf32> -> vector<64x512xf32>
    %c0_4 = arith.constant 0 : index
    %c0_5 = arith.constant 0 : index
    %6 = vector.load %arg4[%c0_4, %c0_5] : memref<1x512xf32, #tpu.memory_space<vmem>>, vector<1x512xf32>
    %7 = vector.broadcast %6 : vector<1x512xf32> to vector<64x512xf32>
    %8 = arith.addf %5, %7 : vector<64x512xf32>
    %c0_6 = arith.constant 0 : index
    %c0_7 = arith.constant 0 : index
    %9 = vector.load %arg6[%c0_6, %c0_7] : memref<64x512xf32, #tpu.memory_space<vmem>>, vector<64x512xf32>
    tpu.vector_store %arg6[%c0_6, %c0_7], %8 {strides = array<i32>} : memref<64x512xf32, #tpu.memory_space<vmem>>, vector<64x512xf32>,
    %c0_8 = arith.constant 0 : index
    %c0_9 = arith.constant 0 : index
    %10 = vector.load %arg7[%c0_8, %c0_9] : memref<8x128xf32, #tpu.memory_space<vmem>>, vector<8x128xf32>
    %c0_10 = arith.constant 0 : index
    %c0_11 = arith.constant 0 : index
    %11 = vector.load %arg8[%c0_10, %c0_11] : memref<8x128xf32, #tpu.memory_space<vmem>>, vector<8x128xf32>
    %c0_i32_12 = arith.constant 0 : i32
    %c8_i32 = arith.constant 8 : i32
    %12 = arith.muli %c0_i32_12, %c8_i32 : i32
    %13 = tpu.assume_multiple %12, 8 : i32
    %14 = arith.index_cast %13 : i32 to index
    %c0_13 = arith.constant 0 : index
    %15 = vector.load %arg6[%14, %c0_13] : memref<64x512xf32, #tpu.memory_space<vmem>>, vector<8x512xf32>
    %c0_14 = arith.constant 0 : index
    %c0_15 = arith.constant 0 : index
    %16 = vector.load %arg3[%c0_14, %c0_15] : memref<128x512xf32, #tpu.memory_space<vmem>>, vector<128x512xf32>
    %cst_16 = arith.constant dense<0.000000e+00> : vector<8x512xf32>
    %17 = tpu.matmul %10, %16, %cst_16 {dimension_numbers = #tpu.dot_dimension_numbers<[1], [0], [0], [1], [0, 0, 1, 1], [], []>} : vector<8x128xf32>, vector<128x512xf32>, vector<8x512xf32> -> vector<8x512xf32>
    %18 = arith.addf %15, %17 : vector<8x512xf32>
    %19 = vector.extract_strided_slice %18 {offsets = [0, 0], sizes = [8, 128], strides = [1, 1]} : vector<8x512xf32> to vector<8x128xf32>
    %cst_17 = arith.constant 5.000000e-01 : f32
    %20 = vector.broadcast %cst_17 : f32 to vector<8x128xf32>
    %21 = arith.mulf %20, %19 : vector<8x128xf32>
    %22 = math.tanh %21 : vector<8x128xf32>
    %cst_18 = arith.constant 1.000000e+00 : f32
    %23 = vector.broadcast %cst_18 : f32 to vector<8x128xf32>
    %24 = arith.addf %22, %23 : vector<8x128xf32>
    %cst_19 = arith.constant 5.000000e-01 : f32
    %25 = vector.broadcast %cst_19 : f32 to vector<8x128xf32>
    %26 = arith.mulf %25, %24 : vector<8x128xf32>
    %27 = vector.extract_strided_slice %18 {offsets = [0, 128], sizes = [8, 128], strides = [1, 1]} : vector<8x512xf32> to vector<8x128xf32>
    %cst_20 = arith.constant 5.000000e-01 : f32
    %28 = vector.broadcast %cst_20 : f32 to vector<8x128xf32>
    %29 = arith.mulf %28, %27 : vector<8x128xf32>
    %30 = math.tanh %29 : vector<8x128xf32>
    %cst_21 = arith.constant 1.000000e+00 : f32
    %31 = vector.broadcast %cst_21 : f32 to vector<8x128xf32>
    %32 = arith.addf %30, %31 : vector<8x128xf32>
    %cst_22 = arith.constant 5.000000e-01 : f32
    %33 = vector.broadcast %cst_22 : f32 to vector<8x128xf32>
    %34 = arith.mulf %33, %32 : vector<8x128xf32>
    %35 = vector.extract_strided_slice %18 {offsets = [0, 256], sizes = [8, 128], strides = [1, 1]} : vector<8x512xf32> to vector<8x128xf32>
    %36 = math.tanh %35 : vector<8x128xf32>
    %37 = vector.extract_strided_slice %18 {offsets = [0, 384], sizes = [8, 128], strides = [1, 1]} : vector<8x512xf32> to vector<8x128xf32>
    %cst_23 = arith.constant 5.000000e-01 : f32
    %38 = vector.broadcast %cst_23 : f32 to vector<8x128xf32>
    %39 = arith.mulf %38, %37 : vector<8x128xf32>
    %40 = math.tanh %39 : vector<8x128xf32>
    %cst_24 = arith.constant 1.000000e+00 : f32
    %41 = vector.broadcast %cst_24 : f32 to vector<8x128xf32>
    %42 = arith.addf %40, %41 : vector<8x128xf32>
    %cst_25 = arith.constant 5.000000e-01 : f32
    %43 = vector.broadcast %cst_25 : f32 to vector<8x128xf32>
    %44 = arith.mulf %43, %42 : vector<8x128xf32>
    %45 = arith.mulf %34, %11 : vector<8x128xf32>
    %46 = arith.mulf %26, %36 : vector<8x128xf32>
    %47 = arith.addf %45, %46 : vector<8x128xf32>
    %48 = math.tanh %47 : vector<8x128xf32>
    %49 = arith.mulf %44, %48 : vector<8x128xf32>
    %c1_i32 = arith.constant 1 : i32
    %c8_i32_26 = arith.constant 8 : i32
    %50 = arith.muli %c1_i32, %c8_i32_26 : i32
    %51 = tpu.assume_multiple %50, 8 : i32
    %52 = arith.index_cast %51 : i32 to index
    %c0_27 = arith.constant 0 : index
    %53 = vector.load %arg6[%52, %c0_27] : memref<64x512xf32, #tpu.memory_space<vmem>>, vector<8x512xf32>
    %c0_28 = arith.constant 0 : index
    %c0_29 = arith.constant 0 : index
    %54 = vector.load %arg3[%c0_28, %c0_29] : memref<128x512xf32, #tpu.memory_space<vmem>>, vector<128x512xf32>
    %cst_30 = arith.constant dense<0.000000e+00> : vector<8x512xf32>
    %55 = tpu.matmul %49, %54, %cst_30 {dimension_numbers = #tpu.dot_dimension_numbers<[1], [0], [0], [1], [0, 0, 1, 1], [], []>} : vector<8x128xf32>, vector<128x512xf32>, vector<8x512xf32> -> vector<8x512xf32>
    %56 = arith.addf %53, %55 : vector<8x512xf32>
    %57 = vector.extract_strided_slice %56 {offsets = [0, 0], sizes = [8, 128], strides = [1, 1]} : vector<8x512xf32> to vector<8x128xf32>
    %cst_31 = arith.constant 5.000000e-01 : f32
    %58 = vector.broadcast %cst_31 : f32 to vector<8x128xf32>
    %59 = arith.mulf %58, %57 : vector<8x128xf32>
    %60 = math.tanh %59 : vector<8x128xf32>
    %cst_32 = arith.constant 1.000000e+00 : f32
    %61 = vector.broadcast %cst_32 : f32 to vector<8x128xf32>
    %62 = arith.addf %60, %61 : vector<8x128xf32>
    %cst_33 = arith.constant 5.000000e-01 : f32
    %63 = vector.broadcast %cst_33 : f32 to vector<8x128xf32>
    %64 = arith.mulf %63, %62 : vector<8x128xf32>
    %65 = vector.extract_strided_slice %56 {offsets = [0, 128], sizes = [8, 128], strides = [1, 1]} : vector<8x512xf32> to vector<8x128xf32>
    %cst_34 = arith.constant 5.000000e-01 : f32
    %66 = vector.broadcast %cst_34 : f32 to vector<8x128xf32>
    %67 = arith.mulf %66, %65 : vector<8x128xf32>
    %68 = math.tanh %67 : vector<8x128xf32>
    %cst_35 = arith.constant 1.000000e+00 : f32
    %69 = vector.broadcast %cst_35 : f32 to vector<8x128xf32>
    %70 = arith.addf %68, %69 : vector<8x128xf32>
    %cst_36 = arith.constant 5.000000e-01 : f32
    %71 = vector.broadcast %cst_36 : f32 to vector<8x128xf32>
    %72 = arith.mulf %71, %70 : vector<8x128xf32>
    %73 = vector.extract_strided_slice %56 {offsets = [0, 256], sizes = [8, 128], strides = [1, 1]} : vector<8x512xf32> to vector<8x128xf32>
    %74 = math.tanh %73 : vector<8x128xf32>
    %75 = vector.extract_strided_slice %56 {offsets = [0, 384], sizes = [8, 128], strides = [1, 1]} : vector<8x512xf32> to vector<8x128xf32>
    %cst_37 = arith.constant 5.000000e-01 : f32
    %76 = vector.broadcast %cst_37 : f32 to vector<8x128xf32>
    %77 = arith.mulf %76, %75 : vector<8x128xf32>
    %78 = math.tanh %77 : vector<8x128xf32>
    %cst_38 = arith.constant 1.000000e+00 : f32
    %79 = vector.broadcast %cst_38 : f32 to vector<8x128xf32>
    %80 = arith.addf %78, %79 : vector<8x128xf32>
    %cst_39 = arith.constant 5.000000e-01 : f32
    %81 = vector.broadcast %cst_39 : f32 to vector<8x128xf32>
    %82 = arith.mulf %81, %80 : vector<8x128xf32>
    %83 = arith.mulf %72, %47 : vector<8x128xf32>
    %84 = arith.mulf %64, %74 : vector<8x128xf32>
    %85 = arith.addf %83, %84 : vector<8x128xf32>
    %86 = math.tanh %85 : vector<8x128xf32>
    %87 = arith.mulf %82, %86 : vector<8x128xf32>
    %c2_i32 = arith.constant 2 : i32
    %c8_i32_40 = arith.constant 8 : i32
    %88 = arith.muli %c2_i32, %c8_i32_40 : i32
    %89 = tpu.assume_multiple %88, 8 : i32
    %90 = arith.index_cast %89 : i32 to index
    %c0_41 = arith.constant 0 : index
    %91 = vector.load %arg6[%90, %c0_41] : memref<64x512xf32, #tpu.memory_space<vmem>>, vector<8x512xf32>
    %c0_42 = arith.constant 0 : index
    %c0_43 = arith.constant 0 : index
    %92 = vector.load %arg3[%c0_42, %c0_43] : memref<128x512xf32, #tpu.memory_space<vmem>>, vector<128x512xf32>
    %cst_44 = arith.constant dense<0.000000e+00> : vector<8x512xf32>
    %93 = tpu.matmul %87, %92, %cst_44 {dimension_numbers = #tpu.dot_dimension_numbers<[1], [0], [0], [1], [0, 0, 1, 1], [], []>} : vector<8x128xf32>, vector<128x512xf32>, vector<8x512xf32> -> vector<8x512xf32>
    %94 = arith.addf %91, %93 : vector<8x512xf32>
    %95 = vector.extract_strided_slice %94 {offsets = [0, 0], sizes = [8, 128], strides = [1, 1]} : vector<8x512xf32> to vector<8x128xf32>
    %cst_45 = arith.constant 5.000000e-01 : f32
    %96 = vector.broadcast %cst_45 : f32 to vector<8x128xf32>
    %97 = arith.mulf %96, %95 : vector<8x128xf32>
    %98 = math.tanh %97 : vector<8x128xf32>
    %cst_46 = arith.constant 1.000000e+00 : f32
    %99 = vector.broadcast %cst_46 : f32 to vector<8x128xf32>
    %100 = arith.addf %98, %99 : vector<8x128xf32>
    %cst_47 = arith.constant 5.000000e-01 : f32
    %101 = vector.broadcast %cst_47 : f32 to vector<8x128xf32>
    %102 = arith.mulf %101, %100 : vector<8x128xf32>
    %103 = vector.extract_strided_slice %94 {offsets = [0, 128], sizes = [8, 128], strides = [1, 1]} : vector<8x512xf32> to vector<8x128xf32>
    %cst_48 = arith.constant 5.000000e-01 : f32
    %104 = vector.broadcast %cst_48 : f32 to vector<8x128xf32>
    %105 = arith.mulf %104, %103 : vector<8x128xf32>
    %106 = math.tanh %105 : vector<8x128xf32>
    %cst_49 = arith.constant 1.000000e+00 : f32
    %107 = vector.broadcast %cst_49 : f32 to vector<8x128xf32>
    %108 = arith.addf %106, %107 : vector<8x128xf32>
    %cst_50 = arith.constant 5.000000e-01 : f32
    %109 = vector.broadcast %cst_50 : f32 to vector<8x128xf32>
    %110 = arith.mulf %109, %108 : vector<8x128xf32>
    %111 = vector.extract_strided_slice %94 {offsets = [0, 256], sizes = [8, 128], strides = [1, 1]} : vector<8x512xf32> to vector<8x128xf32>
    %112 = math.tanh %111 : vector<8x128xf32>
    %113 = vector.extract_strided_slice %94 {offsets = [0, 384], sizes = [8, 128], strides = [1, 1]} : vector<8x512xf32> to vector<8x128xf32>
    %cst_51 = arith.constant 5.000000e-01 : f32
    %114 = vector.broadcast %cst_51 : f32 to vector<8x128xf32>
    %115 = arith.mulf %114, %113 : vector<8x128xf32>
    %116 = math.tanh %115 : vector<8x128xf32>
    %cst_52 = arith.constant 1.000000e+00 : f32
    %117 = vector.broadcast %cst_52 : f32 to vector<8x128xf32>
    %118 = arith.addf %116, %117 : vector<8x128xf32>
    %cst_53 = arith.constant 5.000000e-01 : f32
    %119 = vector.broadcast %cst_53 : f32 to vector<8x128xf32>
    %120 = arith.mulf %119, %118 : vector<8x128xf32>
    %121 = arith.mulf %110, %85 : vector<8x128xf32>
    %122 = arith.mulf %102, %112 : vector<8x128xf32>
    %123 = arith.addf %121, %122 : vector<8x128xf32>
    %124 = math.tanh %123 : vector<8x128xf32>
    %125 = arith.mulf %120, %124 : vector<8x128xf32>
    %c3_i32 = arith.constant 3 : i32
    %c8_i32_54 = arith.constant 8 : i32
    %126 = arith.muli %c3_i32, %c8_i32_54 : i32
    %127 = tpu.assume_multiple %126, 8 : i32
    %128 = arith.index_cast %127 : i32 to index
    %c0_55 = arith.constant 0 : index
    %129 = vector.load %arg6[%128, %c0_55] : memref<64x512xf32, #tpu.memory_space<vmem>>, vector<8x512xf32>
    %c0_56 = arith.constant 0 : index
    %c0_57 = arith.constant 0 : index
    %130 = vector.load %arg3[%c0_56, %c0_57] : memref<128x512xf32, #tpu.memory_space<vmem>>, vector<128x512xf32>
    %cst_58 = arith.constant dense<0.000000e+00> : vector<8x512xf32>
    %131 = tpu.matmul %125, %130, %cst_58 {dimension_numbers = #tpu.dot_dimension_numbers<[1], [0], [0], [1], [0, 0, 1, 1], [], []>} : vector<8x128xf32>, vector<128x512xf32>, vector<8x512xf32> -> vector<8x512xf32>
    %132 = arith.addf %129, %131 : vector<8x512xf32>
    %133 = vector.extract_strided_slice %132 {offsets = [0, 0], sizes = [8, 128], strides = [1, 1]} : vector<8x512xf32> to vector<8x128xf32>
    %cst_59 = arith.constant 5.000000e-01 : f32
    %134 = vector.broadcast %cst_59 : f32 to vector<8x128xf32>
    %135 = arith.mulf %134, %133 : vector<8x128xf32>
    %136 = math.tanh %135 : vector<8x128xf32>
    %cst_60 = arith.constant 1.000000e+00 : f32
    %137 = vector.broadcast %cst_60 : f32 to vector<8x128xf32>
    %138 = arith.addf %136, %137 : vector<8x128xf32>
    %cst_61 = arith.constant 5.000000e-01 : f32
    %139 = vector.broadcast %cst_61 : f32 to vector<8x128xf32>
    %140 = arith.mulf %139, %138 : vector<8x128xf32>
    %141 = vector.extract_strided_slice %132 {offsets = [0, 128], sizes = [8, 128], strides = [1, 1]} : vector<8x512xf32> to vector<8x128xf32>
    %cst_62 = arith.constant 5.000000e-01 : f32
    %142 = vector.broadcast %cst_62 : f32 to vector<8x128xf32>
    %143 = arith.mulf %142, %141 : vector<8x128xf32>
    %144 = math.tanh %143 : vector<8x128xf32>
    %cst_63 = arith.constant 1.000000e+00 : f32
    %145 = vector.broadcast %cst_63 : f32 to vector<8x128xf32>
    %146 = arith.addf %144, %145 : vector<8x128xf32>
    %cst_64 = arith.constant 5.000000e-01 : f32
    %147 = vector.broadcast %cst_64 : f32 to vector<8x128xf32>
    %148 = arith.mulf %147, %146 : vector<8x128xf32>
    %149 = vector.extract_strided_slice %132 {offsets = [0, 256], sizes = [8, 128], strides = [1, 1]} : vector<8x512xf32> to vector<8x128xf32>
    %150 = math.tanh %149 : vector<8x128xf32>
    %151 = vector.extract_strided_slice %132 {offsets = [0, 384], sizes = [8, 128], strides = [1, 1]} : vector<8x512xf32> to vector<8x128xf32>
    %cst_65 = arith.constant 5.000000e-01 : f32
    %152 = vector.broadcast %cst_65 : f32 to vector<8x128xf32>
    %153 = arith.mulf %152, %151 : vector<8x128xf32>
    %154 = math.tanh %153 : vector<8x128xf32>
    %cst_66 = arith.constant 1.000000e+00 : f32
    %155 = vector.broadcast %cst_66 : f32 to vector<8x128xf32>
    %156 = arith.addf %154, %155 : vector<8x128xf32>
    %cst_67 = arith.constant 5.000000e-01 : f32
    %157 = vector.broadcast %cst_67 : f32 to vector<8x128xf32>
    %158 = arith.mulf %157, %156 : vector<8x128xf32>
    %159 = arith.mulf %148, %123 : vector<8x128xf32>
    %160 = arith.mulf %140, %150 : vector<8x128xf32>
    %161 = arith.addf %159, %160 : vector<8x128xf32>
    %162 = math.tanh %161 : vector<8x128xf32>
    %163 = arith.mulf %158, %162 : vector<8x128xf32>
    %c4_i32 = arith.constant 4 : i32
    %c8_i32_68 = arith.constant 8 : i32
    %164 = arith.muli %c4_i32, %c8_i32_68 : i32
    %165 = tpu.assume_multiple %164, 8 : i32
    %166 = arith.index_cast %165 : i32 to index
    %c0_69 = arith.constant 0 : index
    %167 = vector.load %arg6[%166, %c0_69] : memref<64x512xf32, #tpu.memory_space<vmem>>, vector<8x512xf32>
    %c0_70 = arith.constant 0 : index
    %c0_71 = arith.constant 0 : index
    %168 = vector.load %arg3[%c0_70, %c0_71] : memref<128x512xf32, #tpu.memory_space<vmem>>, vector<128x512xf32>
    %cst_72 = arith.constant dense<0.000000e+00> : vector<8x512xf32>
    %169 = tpu.matmul %163, %168, %cst_72 {dimension_numbers = #tpu.dot_dimension_numbers<[1], [0], [0], [1], [0, 0, 1, 1], [], []>} : vector<8x128xf32>, vector<128x512xf32>, vector<8x512xf32> -> vector<8x512xf32>
    %170 = arith.addf %167, %169 : vector<8x512xf32>
    %171 = vector.extract_strided_slice %170 {offsets = [0, 0], sizes = [8, 128], strides = [1, 1]} : vector<8x512xf32> to vector<8x128xf32>
    %cst_73 = arith.constant 5.000000e-01 : f32
    %172 = vector.broadcast %cst_73 : f32 to vector<8x128xf32>
    %173 = arith.mulf %172, %171 : vector<8x128xf32>
    %174 = math.tanh %173 : vector<8x128xf32>
    %cst_74 = arith.constant 1.000000e+00 : f32
    %175 = vector.broadcast %cst_74 : f32 to vector<8x128xf32>
    %176 = arith.addf %174, %175 : vector<8x128xf32>
    %cst_75 = arith.constant 5.000000e-01 : f32
    %177 = vector.broadcast %cst_75 : f32 to vector<8x128xf32>
    %178 = arith.mulf %177, %176 : vector<8x128xf32>
    %179 = vector.extract_strided_slice %170 {offsets = [0, 128], sizes = [8, 128], strides = [1, 1]} : vector<8x512xf32> to vector<8x128xf32>
    %cst_76 = arith.constant 5.000000e-01 : f32
    %180 = vector.broadcast %cst_76 : f32 to vector<8x128xf32>
    %181 = arith.mulf %180, %179 : vector<8x128xf32>
    %182 = math.tanh %181 : vector<8x128xf32>
    %cst_77 = arith.constant 1.000000e+00 : f32
    %183 = vector.broadcast %cst_77 : f32 to vector<8x128xf32>
    %184 = arith.addf %182, %183 : vector<8x128xf32>
    %cst_78 = arith.constant 5.000000e-01 : f32
    %185 = vector.broadcast %cst_78 : f32 to vector<8x128xf32>
    %186 = arith.mulf %185, %184 : vector<8x128xf32>
    %187 = vector.extract_strided_slice %170 {offsets = [0, 256], sizes = [8, 128], strides = [1, 1]} : vector<8x512xf32> to vector<8x128xf32>
    %188 = math.tanh %187 : vector<8x128xf32>
    %189 = vector.extract_strided_slice %170 {offsets = [0, 384], sizes = [8, 128], strides = [1, 1]} : vector<8x512xf32> to vector<8x128xf32>
    %cst_79 = arith.constant 5.000000e-01 : f32
    %190 = vector.broadcast %cst_79 : f32 to vector<8x128xf32>
    %191 = arith.mulf %190, %189 : vector<8x128xf32>
    %192 = math.tanh %191 : vector<8x128xf32>
    %cst_80 = arith.constant 1.000000e+00 : f32
    %193 = vector.broadcast %cst_80 : f32 to vector<8x128xf32>
    %194 = arith.addf %192, %193 : vector<8x128xf32>
    %cst_81 = arith.constant 5.000000e-01 : f32
    %195 = vector.broadcast %cst_81 : f32 to vector<8x128xf32>
    %196 = arith.mulf %195, %194 : vector<8x128xf32>
    %197 = arith.mulf %186, %161 : vector<8x128xf32>
    %198 = arith.mulf %178, %188 : vector<8x128xf32>
    %199 = arith.addf %197, %198 : vector<8x128xf32>
    %200 = math.tanh %199 : vector<8x128xf32>
    %201 = arith.mulf %196, %200 : vector<8x128xf32>
    %c5_i32 = arith.constant 5 : i32
    %c8_i32_82 = arith.constant 8 : i32
    %202 = arith.muli %c5_i32, %c8_i32_82 : i32
    %203 = tpu.assume_multiple %202, 8 : i32
    %204 = arith.index_cast %203 : i32 to index
    %c0_83 = arith.constant 0 : index
    %205 = vector.load %arg6[%204, %c0_83] : memref<64x512xf32, #tpu.memory_space<vmem>>, vector<8x512xf32>
    %c0_84 = arith.constant 0 : index
    %c0_85 = arith.constant 0 : index
    %206 = vector.load %arg3[%c0_84, %c0_85] : memref<128x512xf32, #tpu.memory_space<vmem>>, vector<128x512xf32>
    %cst_86 = arith.constant dense<0.000000e+00> : vector<8x512xf32>
    %207 = tpu.matmul %201, %206, %cst_86 {dimension_numbers = #tpu.dot_dimension_numbers<[1], [0], [0], [1], [0, 0, 1, 1], [], []>} : vector<8x128xf32>, vector<128x512xf32>, vector<8x512xf32> -> vector<8x512xf32>
    %208 = arith.addf %205, %207 : vector<8x512xf32>
    %209 = vector.extract_strided_slice %208 {offsets = [0, 0], sizes = [8, 128], strides = [1, 1]} : vector<8x512xf32> to vector<8x128xf32>
    %cst_87 = arith.constant 5.000000e-01 : f32
    %210 = vector.broadcast %cst_87 : f32 to vector<8x128xf32>
    %211 = arith.mulf %210, %209 : vector<8x128xf32>
    %212 = math.tanh %211 : vector<8x128xf32>
    %cst_88 = arith.constant 1.000000e+00 : f32
    %213 = vector.broadcast %cst_88 : f32 to vector<8x128xf32>
    %214 = arith.addf %212, %213 : vector<8x128xf32>
    %cst_89 = arith.constant 5.000000e-01 : f32
    %215 = vector.broadcast %cst_89 : f32 to vector<8x128xf32>
    %216 = arith.mulf %215, %214 : vector<8x128xf32>
    %217 = vector.extract_strided_slice %208 {offsets = [0, 128], sizes = [8, 128], strides = [1, 1]} : vector<8x512xf32> to vector<8x128xf32>
    %cst_90 = arith.constant 5.000000e-01 : f32
    %218 = vector.broadcast %cst_90 : f32 to vector<8x128xf32>
    %219 = arith.mulf %218, %217 : vector<8x128xf32>
    %220 = math.tanh %219 : vector<8x128xf32>
    %cst_91 = arith.constant 1.000000e+00 : f32
    %221 = vector.broadcast %cst_91 : f32 to vector<8x128xf32>
    %222 = arith.addf %220, %221 : vector<8x128xf32>
    %cst_92 = arith.constant 5.000000e-01 : f32
    %223 = vector.broadcast %cst_92 : f32 to vector<8x128xf32>
    %224 = arith.mulf %223, %222 : vector<8x128xf32>
    %225 = vector.extract_strided_slice %208 {offsets = [0, 256], sizes = [8, 128], strides = [1, 1]} : vector<8x512xf32> to vector<8x128xf32>
    %226 = math.tanh %225 : vector<8x128xf32>
    %227 = vector.extract_strided_slice %208 {offsets = [0, 384], sizes = [8, 128], strides = [1, 1]} : vector<8x512xf32> to vector<8x128xf32>
    %cst_93 = arith.constant 5.000000e-01 : f32
    %228 = vector.broadcast %cst_93 : f32 to vector<8x128xf32>
    %229 = arith.mulf %228, %227 : vector<8x128xf32>
    %230 = math.tanh %229 : vector<8x128xf32>
    %cst_94 = arith.constant 1.000000e+00 : f32
    %231 = vector.broadcast %cst_94 : f32 to vector<8x128xf32>
    %232 = arith.addf %230, %231 : vector<8x128xf32>
    %cst_95 = arith.constant 5.000000e-01 : f32
    %233 = vector.broadcast %cst_95 : f32 to vector<8x128xf32>
    %234 = arith.mulf %233, %232 : vector<8x128xf32>
    %235 = arith.mulf %224, %199 : vector<8x128xf32>
    %236 = arith.mulf %216, %226 : vector<8x128xf32>
    %237 = arith.addf %235, %236 : vector<8x128xf32>
    %238 = math.tanh %237 : vector<8x128xf32>
    %239 = arith.mulf %234, %238 : vector<8x128xf32>
    %c6_i32 = arith.constant 6 : i32
    %c8_i32_96 = arith.constant 8 : i32
    %240 = arith.muli %c6_i32, %c8_i32_96 : i32
    %241 = tpu.assume_multiple %240, 8 : i32
    %242 = arith.index_cast %241 : i32 to index
    %c0_97 = arith.constant 0 : index
    %243 = vector.load %arg6[%242, %c0_97] : memref<64x512xf32, #tpu.memory_space<vmem>>, vector<8x512xf32>
    %c0_98 = arith.constant 0 : index
    %c0_99 = arith.constant 0 : index
    %244 = vector.load %arg3[%c0_98, %c0_99] : memref<128x512xf32, #tpu.memory_space<vmem>>, vector<128x512xf32>
    %cst_100 = arith.constant dense<0.000000e+00> : vector<8x512xf32>
    %245 = tpu.matmul %239, %244, %cst_100 {dimension_numbers = #tpu.dot_dimension_numbers<[1], [0], [0], [1], [0, 0, 1, 1], [], []>} : vector<8x128xf32>, vector<128x512xf32>, vector<8x512xf32> -> vector<8x512xf32>
    %246 = arith.addf %243, %245 : vector<8x512xf32>
    %247 = vector.extract_strided_slice %246 {offsets = [0, 0], sizes = [8, 128], strides = [1, 1]} : vector<8x512xf32> to vector<8x128xf32>
    %cst_101 = arith.constant 5.000000e-01 : f32
    %248 = vector.broadcast %cst_101 : f32 to vector<8x128xf32>
    %249 = arith.mulf %248, %247 : vector<8x128xf32>
    %250 = math.tanh %249 : vector<8x128xf32>
    %cst_102 = arith.constant 1.000000e+00 : f32
    %251 = vector.broadcast %cst_102 : f32 to vector<8x128xf32>
    %252 = arith.addf %250, %251 : vector<8x128xf32>
    %cst_103 = arith.constant 5.000000e-01 : f32
    %253 = vector.broadcast %cst_103 : f32 to vector<8x128xf32>
    %254 = arith.mulf %253, %252 : vector<8x128xf32>
    %255 = vector.extract_strided_slice %246 {offsets = [0, 128], sizes = [8, 128], strides = [1, 1]} : vector<8x512xf32> to vector<8x128xf32>
    %cst_104 = arith.constant 5.000000e-01 : f32
    %256 = vector.broadcast %cst_104 : f32 to vector<8x128xf32>
    %257 = arith.mulf %256, %255 : vector<8x128xf32>
    %258 = math.tanh %257 : vector<8x128xf32>
    %cst_105 = arith.constant 1.000000e+00 : f32
    %259 = vector.broadcast %cst_105 : f32 to vector<8x128xf32>
    %260 = arith.addf %258, %259 : vector<8x128xf32>
    %cst_106 = arith.constant 5.000000e-01 : f32
    %261 = vector.broadcast %cst_106 : f32 to vector<8x128xf32>
    %262 = arith.mulf %261, %260 : vector<8x128xf32>
    %263 = vector.extract_strided_slice %246 {offsets = [0, 256], sizes = [8, 128], strides = [1, 1]} : vector<8x512xf32> to vector<8x128xf32>
    %264 = math.tanh %263 : vector<8x128xf32>
    %265 = vector.extract_strided_slice %246 {offsets = [0, 384], sizes = [8, 128], strides = [1, 1]} : vector<8x512xf32> to vector<8x128xf32>
    %cst_107 = arith.constant 5.000000e-01 : f32
    %266 = vector.broadcast %cst_107 : f32 to vector<8x128xf32>
    %267 = arith.mulf %266, %265 : vector<8x128xf32>
    %268 = math.tanh %267 : vector<8x128xf32>
    %cst_108 = arith.constant 1.000000e+00 : f32
    %269 = vector.broadcast %cst_108 : f32 to vector<8x128xf32>
    %270 = arith.addf %268, %269 : vector<8x128xf32>
    %cst_109 = arith.constant 5.000000e-01 : f32
    %271 = vector.broadcast %cst_109 : f32 to vector<8x128xf32>
    %272 = arith.mulf %271, %270 : vector<8x128xf32>
    %273 = arith.mulf %262, %237 : vector<8x128xf32>
    %274 = arith.mulf %254, %264 : vector<8x128xf32>
    %275 = arith.addf %273, %274 : vector<8x128xf32>
    %276 = math.tanh %275 : vector<8x128xf32>
    %277 = arith.mulf %272, %276 : vector<8x128xf32>
    %c7_i32 = arith.constant 7 : i32
    %c8_i32_110 = arith.constant 8 : i32
    %278 = arith.muli %c7_i32, %c8_i32_110 : i32
    %279 = tpu.assume_multiple %278, 8 : i32
    %280 = arith.index_cast %279 : i32 to index
    %c0_111 = arith.constant 0 : index
    %281 = vector.load %arg6[%280, %c0_111] : memref<64x512xf32, #tpu.memory_space<vmem>>, vector<8x512xf32>
    %c0_112 = arith.constant 0 : index
    %c0_113 = arith.constant 0 : index
    %282 = vector.load %arg3[%c0_112, %c0_113] : memref<128x512xf32, #tpu.memory_space<vmem>>, vector<128x512xf32>
    %cst_114 = arith.constant dense<0.000000e+00> : vector<8x512xf32>
    %283 = tpu.matmul %277, %282, %cst_114 {dimension_numbers = #tpu.dot_dimension_numbers<[1], [0], [0], [1], [0, 0, 1, 1], [], []>} : vector<8x128xf32>, vector<128x512xf32>, vector<8x512xf32> -> vector<8x512xf32>
    %284 = arith.addf %281, %283 : vector<8x512xf32>
    %285 = vector.extract_strided_slice %284 {offsets = [0, 0], sizes = [8, 128], strides = [1, 1]} : vector<8x512xf32> to vector<8x128xf32>
    %cst_115 = arith.constant 5.000000e-01 : f32
    %286 = vector.broadcast %cst_115 : f32 to vector<8x128xf32>
    %287 = arith.mulf %286, %285 : vector<8x128xf32>
    %288 = math.tanh %287 : vector<8x128xf32>
    %cst_116 = arith.constant 1.000000e+00 : f32
    %289 = vector.broadcast %cst_116 : f32 to vector<8x128xf32>
    %290 = arith.addf %288, %289 : vector<8x128xf32>
    %cst_117 = arith.constant 5.000000e-01 : f32
    %291 = vector.broadcast %cst_117 : f32 to vector<8x128xf32>
    %292 = arith.mulf %291, %290 : vector<8x128xf32>
    %293 = vector.extract_strided_slice %284 {offsets = [0, 128], sizes = [8, 128], strides = [1, 1]} : vector<8x512xf32> to vector<8x128xf32>
    %cst_118 = arith.constant 5.000000e-01 : f32
    %294 = vector.broadcast %cst_118 : f32 to vector<8x128xf32>
    %295 = arith.mulf %294, %293 : vector<8x128xf32>
    %296 = math.tanh %295 : vector<8x128xf32>
    %cst_119 = arith.constant 1.000000e+00 : f32
    %297 = vector.broadcast %cst_119 : f32 to vector<8x128xf32>
    %298 = arith.addf %296, %297 : vector<8x128xf32>
    %cst_120 = arith.constant 5.000000e-01 : f32
    %299 = vector.broadcast %cst_120 : f32 to vector<8x128xf32>
    %300 = arith.mulf %299, %298 : vector<8x128xf32>
    %301 = vector.extract_strided_slice %284 {offsets = [0, 256], sizes = [8, 128], strides = [1, 1]} : vector<8x512xf32> to vector<8x128xf32>
    %302 = math.tanh %301 : vector<8x128xf32>
    %303 = vector.extract_strided_slice %284 {offsets = [0, 384], sizes = [8, 128], strides = [1, 1]} : vector<8x512xf32> to vector<8x128xf32>
    %cst_121 = arith.constant 5.000000e-01 : f32
    %304 = vector.broadcast %cst_121 : f32 to vector<8x128xf32>
    %305 = arith.mulf %304, %303 : vector<8x128xf32>
    %306 = math.tanh %305 : vector<8x128xf32>
    %cst_122 = arith.constant 1.000000e+00 : f32
    %307 = vector.broadcast %cst_122 : f32 to vector<8x128xf32>
    %308 = arith.addf %306, %307 : vector<8x128xf32>
    %cst_123 = arith.constant 5.000000e-01 : f32
    %309 = vector.broadcast %cst_123 : f32 to vector<8x128xf32>
    %310 = arith.mulf %309, %308 : vector<8x128xf32>
    %311 = arith.mulf %300, %275 : vector<8x128xf32>
    %312 = arith.mulf %292, %302 : vector<8x128xf32>
    %313 = arith.addf %311, %312 : vector<8x128xf32>
    %314 = math.tanh %313 : vector<8x128xf32>
    %315 = arith.mulf %310, %314 : vector<8x128xf32>
    %c8_i32_124 = arith.constant 8 : i32
    %c0_125 = arith.constant 0 : index
    %c0_126 = arith.constant 0 : index
    %316 = vector.load %arg7[%c0_125, %c0_126] : memref<8x128xf32, #tpu.memory_space<vmem>>, vector<8x128xf32>
    tpu.vector_store %arg7[%c0_125, %c0_126], %315 {strides = array<i32>} : memref<8x128xf32, #tpu.memory_space<vmem>>, vector<8x128xf32>,
    %c0_127 = arith.constant 0 : index
    %c0_128 = arith.constant 0 : index
    %317 = vector.load %arg8[%c0_127, %c0_128] : memref<8x128xf32, #tpu.memory_space<vmem>>, vector<8x128xf32>
    tpu.vector_store %arg8[%c0_127, %c0_128], %313 {strides = array<i32>} : memref<8x128xf32, #tpu.memory_space<vmem>>, vector<8x128xf32>,
    %c0_i32_129 = arith.constant 0 : i32
    %318 = arith.cmpi eq, %arg0, %c0_i32_129 : i32
    %319 = arith.extui %318 : i1 to i32
    %c0_i32_130 = arith.constant 0 : i32
    %320 = arith.cmpi ne, %319, %c0_i32_130 : i32
    scf.if %320 {
      %c0_131 = arith.constant 0 : index
      %c0_132 = arith.constant 0 : index
      %321 = vector.load %arg5[%c0_131, %c0_132] : memref<8x128xf32, #tpu.memory_space<vmem>>, vector<8x128xf32>
      tpu.vector_store %arg5[%c0_131, %c0_132], %315 {strides = array<i32>} : memref<8x128xf32, #tpu.memory_space<vmem>>, vector<8x128xf32>,
    } else {
    }
    return
  }
  func.func @transform_0(%arg0: i32) -> (i32, i32) {
    %c0_i32 = arith.constant 0 : i32
    %c0_i32_0 = arith.constant 0 : i32
    return %arg0, %c0_i32 : i32, i32
  }
  func.func @transform_1(%arg0: i32) -> (i32, i32) {
    %c0_i32 = arith.constant 0 : i32
    %c0_i32_0 = arith.constant 0 : i32
    %c0_i32_1 = arith.constant 0 : i32
    return %c0_i32, %c0_i32_0 : i32, i32
  }
  func.func @transform_2(%arg0: i32) -> (i32, i32) {
    %c0_i32 = arith.constant 0 : i32
    %c0_i32_0 = arith.constant 0 : i32
    %c0_i32_1 = arith.constant 0 : i32
    return %c0_i32, %c0_i32_0 : i32, i32
  }
  func.func @transform_3(%arg0: i32) -> (i32, i32) {
    %c0_i32 = arith.constant 0 : i32
    %c0_i32_0 = arith.constant 0 : i32
    %c0_i32_1 = arith.constant 0 : i32
    return %c0_i32, %c0_i32_0 : i32, i32
  }
  func.func @transform_4(%arg0: i32) -> (i32, i32) {
    %c0_i32 = arith.constant 0 : i32
    %c0_i32_0 = arith.constant 0 : i32
    %c0_i32_1 = arith.constant 0 : i32
    return %c0_i32, %c0_i32_0 : i32, i32
  }
}

</mosaic_0001>

<bundles_post_ra>
// kernel: tpu_custom_call.1
= control target key start
LH: loop header
LB: loop body
LE: loop exit
PB: predicated region body
PF: predicated region fallthrough
CT: control target
= control target key end

     0   :  { %9 = vsyncpa [#allocation6], 0  ;;  %s2505_s0 = inlined_call_operand.vmem [shape: f32[64,16], index: 0, kind: input, shape index: {}]   ;;  %s2506_s1 = inlined_call_operand.vmem [shape: f32[16,512], index: 1, kind: input, shape index: {}]   ;;  %s2507_s2 = inlined_call_operand.hbm [shape: f32[128,512], index: 2, kind: input, shape index: {}]   ;;  %s2508_s3 = inlined_call_operand.vmem [shape: f32[1,512], index: 3, kind: input, shape index: {}]   ;;  %s2509_s4 = inlined_call_operand.hbm [shape: f32[8,128], index: 4, kind: output, shape index: {}]  }
   0x1   :  { %10 = vsyncpa [#allocation7], 0  ;;  %s19_s17 = sshll.u32 %s2507_s2, 4  ;;  %s1488_s18 = smov [#allocation5]   ;;  %s20_s17 = int_to_ptr.hbm [resolvable:$true] %s19_s17 }
   0x2   :  { %s21_s19 = sshll.u32 %s1488_s18, 4  ;;  %s1489_s20 = smov 512   ;;  %s22_s19 = int_to_ptr.vmem [resolvable:$true] %s21_s19 }
   0x3   :  { %s1490_s21 = smov 32  }
   0x4   :  { %27 = dma.hbm_to_vmem [thread:$0]  %s20_s17, 8192, %s22_s19, [#allocation6], %s1489_s20, %s1489_s20, %s1490_s21  }
   0x5   :  { %1484 = dma.done.wait [#allocation6], 8192  }
   0x6   :  { %1485 = vsyncadd [#allocation6], 4294959104  ;;  %v52_v0 = vld [vmem:[%s2506_s1 + $0x20] sm:$0xff]  ;;  %v53_v1 = vld [vmem:[%s2506_s1 + $0x28] sm:$0xff]  ;;  %vm66_vm0 = vcmask 130048   ;;  %s1238_s29 = sshll.u32 %s2509_s4, 4  ;;  %s1239_s29 = int_to_ptr.hbm [resolvable:$true] %s1238_s29 }
   0x7   :  { %v54_v2 = vld [vmem:[%s2506_s1 + $0x30] sm:$0xff]  ;;  %105 = vmatpush.msra.mxu0 %v52_v0  ;;  %146 = vmatpush.msra.mxu1 %v53_v1  ;;  %v55_v3 = vld [vmem:[%s2506_s1 + $0x38] sm:$0xff]  ;;  %v48_v4 = vld [vmem:[%s2506_s1] sm:$0xff] }
   0x8   :  { %v49_v5 = vld [vmem:[%s2506_s1 + $0x8] sm:$0xff]  ;;  %187 = vmatpush.msra.mxu2 %v54_v2  ;;  %228 = vmatpush.msra.mxu3 %v55_v3  ;;  %v50_v6 = vld [vmem:[%s2506_s1 + $0x10] sm:$0xff]  ;;  %v51_v7 = vld [vmem:[%s2506_s1 + $0x18] sm:$0xff] }
   0x9   :  { %v40_v8 = vld [vmem:[%s2505_s0] sm:$0xff]  ;;  %106 = vmatpush.msra.mxu0 %v48_v4  ;;  %147 = vmatpush.msra.mxu1 %v49_v5  ;;  %v1550_v10 = vld [vmem:[#allocation5 + $0x1e8] sm:$0xff]  ;;  %v1554_v11 = vld [vmem:[#allocation5 + $0x1f0] sm:$0xff] }
   0xa   :  { %188 = vmatpush.msra.mxu2 %v50_v6  ;;  %229 = vmatpush.msra.mxu3 %v51_v7  ;;  %v1548_v9 = vld [vmem:[#allocation5 + $0x1e0] sm:$0xff]  ;;  %v1556_v12 = vld [vmem:[#allocation5 + $0x1f8] sm:$0xff]  ;;  %v1562_v14 = vld [vmem:[#allocation5 + $0x1c8] sm:$0xff] }
   0xb   :  { %1255 = vmatmul.msk.f32.vlgmr.msra.gmra.mxu0 %vm66_vm0, %v40_v8  ;;  %1263 = vmatmul.msk.f32.vlgmr.msra.gmra.mxu1 %vm66_vm0, %v40_v8  ;;  %v1560_v13 = vld [vmem:[#allocation5 + $0x1c0] sm:$0xff]  ;;  %v1566_v15 = vld [vmem:[#allocation5 + $0x1d0] sm:$0xff]  ;;  %v1568_v16 = vld [vmem:[#allocation5 + $0x1d8] sm:$0xff] }
   0xc   :  { %1271 = vmatmul.msk.f32.vlgmr.msra.gmra.mxu2 %vm66_vm0, %v40_v8  ;;  %1279 = vmatmul.msk.f32.vlgmr.msra.gmra.mxu3 %vm66_vm0, %v40_v8  ;;  %v1572_v17 = vld [vmem:[#allocation5 + $0x1a0] sm:$0xff]  ;;  %v1574_v18 = vld [vmem:[#allocation5 + $0x1a8] sm:$0xff]  ;;  %v1578_v19 = vld [vmem:[#allocation5 + $0x1b0] sm:$0xff] }
   0xd   :  { %360 = vmatpush.msrb.mxu0 %v1548_v9  ;;  %380 = vmatpush.msrb.mxu1 %v1550_v10  ;;  %v1580_v20 = vld [vmem:[#allocation5 + $0x1b8] sm:$0xff]  ;;  %v41_v21 = vld [vmem:[%s2505_s0 + $0x8] sm:$0xff]  ;;  %v1590_v22 = vld [vmem:[#allocation5 + $0x180] sm:$0xff] }
   0xe   :  { %400 = vmatpush.msrb.mxu2 %v1554_v11  ;;  %420 = vmatpush.msrb.mxu3 %v1556_v12  ;;  %v1592_v23 = vld [vmem:[#allocation5 + $0x188] sm:$0xff]  ;;  %v1597_v24 = vld [vmem:[#allocation5 + $0x190] sm:$0xff]  ;;  %v1599_v25 = vld [vmem:[#allocation5 + $0x198] sm:$0xff] }
   0xf   :  { %361 = vmatpush.msrb.mxu0 %v1560_v13  ;;  %381 = vmatpush.msrb.mxu1 %v1562_v14  ;;  %v1603_v26 = vld [vmem:[#allocation5 + $0x160] sm:$0xff]  ;;  %v1605_v27 = vld [vmem:[#allocation5 + $0x168] sm:$0xff]  ;;  %v1609_v28 = vld [vmem:[#allocation5 + $0x170] sm:$0xff] }
  0x10   :  { %401 = vmatpush.msrb.mxu2 %v1566_v15  ;;  %421 = vmatpush.msrb.mxu3 %v1568_v16  ;;  %v1611_v29 = vld [vmem:[#allocation5 + $0x178] sm:$0xff]  ;;  %v1615_v30 = vld [vmem:[#allocation5 + $0x140] sm:$0xff]  ;;  %v1617_v31 = vld [vmem:[#allocation5 + $0x148] sm:$0xff] }
  0x11   :  { %362 = vmatpush.msrb.mxu0 %v1572_v17  ;;  %382 = vmatpush.msrb.mxu1 %v1574_v18  ;;  %v1621_v32 = vld [vmem:[#allocation5 + $0x150] sm:$0xff]  ;;  %v1623_v33 = vld [vmem:[#allocation5 + $0x158] sm:$0xff]  ;;  %v1633_v35 = vld [vmem:[#allocation5 + $0x120] sm:$0xff] }
  0x12   :  { %402 = vmatpush.msrb.mxu2 %v1578_v19  ;;  %422 = vmatpush.msrb.mxu3 %v1580_v20  ;;  %v42_v34 = vld [vmem:[%s2505_s0 + $0x10] sm:$0xff]  ;;  %v1635_v36 = vld [vmem:[#allocation5 + $0x128] sm:$0xff]  ;;  %v1642_v38 = vld [vmem:[#allocation5 + $0x138] sm:$0xff] }
  0x13   :  { %1256 = vmatmul.msk.f32.gmra.mxu0 %vm66_vm0, %v41_v21  ;;  %1264 = vmatmul.msk.f32.gmra.mxu1 %vm66_vm0, %v41_v21  ;;  %v1640_v37 = vld [vmem:[#allocation5 + $0x130] sm:$0xff]  ;;  %v1646_v39 = vld [vmem:[#allocation5 + $0x100] sm:$0xff]  ;;  %v1648_v40 = vld [vmem:[#allocation5 + $0x108] sm:$0xff] }
  0x14   :  { %1272 = vmatmul.msk.f32.gmra.mxu2 %vm66_vm0, %v41_v21  ;;  %1280 = vmatmul.msk.f32.gmra.mxu3 %vm66_vm0, %v41_v21  ;;  %v1652_v41 = vld [vmem:[#allocation5 + $0x110] sm:$0xff]  ;;  %v1654_v42 = vld [vmem:[#allocation5 + $0x118] sm:$0xff]  ;;  %v1658_v43 = vld [vmem:[#allocation5 + $0xe0] sm:$0xff] }
  0x15   :  { %363 = vmatpush.msrb.mxu0 %v1590_v22  ;;  %383 = vmatpush.msrb.mxu1 %v1592_v23  ;;  %v1660_v44 = vld [vmem:[#allocation5 + $0xe8] sm:$0xff]  ;;  %v1664_v45 = vld [vmem:[#allocation5 + $0xf0] sm:$0xff]  ;;  %v1666_v46 = vld [vmem:[#allocation5 + $0xf8] sm:$0xff] }
  0x16   :  { %403 = vmatpush.msrb.mxu2 %v1597_v24  ;;  %423 = vmatpush.msrb.mxu3 %v1599_v25  ;;  %v43_v47 = vld [vmem:[%s2505_s0 + $0x18] sm:$0xff]  ;;  %v1676_v48 = vld [vmem:[#allocation5 + $0xc0] sm:$0xff]  ;;  %v1678_v49 = vld [vmem:[#allocation5 + $0xc8] sm:$0xff] }
  0x17   :  { %364 = vmatpush.msrb.mxu0 %v1603_v26  ;;  %384 = vmatpush.msrb.mxu1 %v1605_v27  ;;  %v1683_v50 = vld [vmem:[#allocation5 + $0xd0] sm:$0xff]  ;;  %v1685_v51 = vld [vmem:[#allocation5 + $0xd8] sm:$0xff]  ;;  %v1689_v52 = vld [vmem:[#allocation5 + $0xa0] sm:$0xff] }
  0x18   :  { %404 = vmatpush.msrb.mxu2 %v1609_v28  ;;  %424 = vmatpush.msrb.mxu3 %v1611_v29  ;;  %2600 = vst [vmem:[#allocation11_spill] sm:$0xff] %v1689_v52  ;;  %v1691_v53 = vld [vmem:[#allocation5 + $0xa8] sm:$0xff]  ;;  %v1695_v54 = vld [vmem:[#allocation5 + $0xb0] sm:$0xff]  ;;  %v1697_v55 = vld [vmem:[#allocation5 + $0xb8] sm:$0xff] }
  0x19   :  { %365 = vmatpush.msrb.mxu0 %v1615_v30  ;;  %385 = vmatpush.msrb.mxu1 %v1617_v31  ;;  %2601 = vst [vmem:[#allocation12_spill] sm:$0xff] %v1691_v53  ;;  %v1701_v56 = vld [vmem:[#allocation5 + $0x80] sm:$0xff]  ;;  %v1703_v57 = vld [vmem:[#allocation5 + $0x88] sm:$0xff]  ;;  %v1707_v58 = vld [vmem:[#allocation5 + $0x90] sm:$0xff] }
  0x1a   :  { %405 = vmatpush.msrb.mxu2 %v1621_v32  ;;  %425 = vmatpush.msrb.mxu3 %v1623_v33  ;;  %2602 = vst [vmem:[#allocation13_spill] sm:$0xff] %v1695_v54  ;;  %v1709_v59 = vld [vmem:[#allocation5 + $0x98] sm:$0xff]  ;;  %v44_v60 = vld [vmem:[%s2505_s0 + $0x20] sm:$0xff]  ;;  %v1721_v62 = vld [vmem:[#allocation5 + $0x68] sm:$0xff] }
  0x1b   :  { %1257 = vmatmul.msk.f32.gmra.mxu0 %vm66_vm0, %v42_v34  ;;  %1265 = vmatmul.msk.f32.gmra.mxu1 %vm66_vm0, %v42_v34  ;;  %2603 = vst [vmem:[#allocation14_spill] sm:$0xff] %v1697_v55  ;;  %v1719_v61 = vld [vmem:[#allocation5 + $0x60] sm:$0xff]  ;;  %v1726_v63 = vld [vmem:[#allocation5 + $0x70] sm:$0xff]  ;;  %v1728_v0 = vld [vmem:[#allocation5 + $0x78] sm:$0xff] }
  0x1c   :  { %1273 = vmatmul.msk.f32.gmra.mxu2 %vm66_vm0, %v42_v34  ;;  %1281 = vmatmul.msk.f32.gmra.mxu3 %vm66_vm0, %v42_v34  ;;  %2604 = vst [vmem:[#allocation15_spill] sm:$0xff] %v1701_v56  ;;  %v1732_v1 = vld [vmem:[#allocation5 + $0x40] sm:$0xff]  ;;  %v1734_v2 = vld [vmem:[#allocation5 + $0x48] sm:$0xff]  ;;  %v1738_v3 = vld [vmem:[#allocation5 + $0x50] sm:$0xff] }
  0x1d   :  { %366 = vmatpush.msrb.mxu0 %v1633_v35  ;;  %386 = vmatpush.msrb.mxu1 %v1635_v36  ;;  %2605 = vst [vmem:[#allocation16_spill] sm:$0xff] %v1703_v57  ;;  %v1740_v4 = vld [vmem:[#allocation5 + $0x58] sm:$0xff]  ;;  %v1744_v5 = vld [vmem:[#allocation5 + $0x20] sm:$0xff]  ;;  %v1746_v6 = vld [vmem:[#allocation5 + $0x28] sm:$0xff] }
  0x1e   :  { %406 = vmatpush.msrb.mxu2 %v1640_v37  ;;  %426 = vmatpush.msrb.mxu3 %v1642_v38  ;;  %2606 = vst [vmem:[#allocation17_spill] sm:$0xff] %v1707_v58  ;;  %v1750_v7 = vld [vmem:[#allocation5 + $0x30] sm:$0xff]  ;;  %v1752_v8 = vld [vmem:[#allocation5 + $0x38] sm:$0xff]  ;;  %v45_v21 = vld [vmem:[%s2505_s0 + $0x28] sm:$0xff] }
  0x1f   :  { %367 = vmatpush.msrb.mxu0 %v1646_v39  ;;  %387 = vmatpush.msrb.mxu1 %v1648_v40  ;;  %2607 = vst [vmem:[#allocation18_spill] sm:$0xff] %v1709_v59  ;;  %v1762_v34 = vld [vmem:[#allocation5] sm:$0xff] }
  0x20   :  { %407 = vmatpush.msrb.mxu2 %v1652_v41  ;;  %427 = vmatpush.msrb.mxu3 %v1654_v42  ;;  %2608 = vst [vmem:[#allocation19_spill] sm:$0xff] %v1719_v61 }
  0x21   :  { %368 = vmatpush.msrb.mxu0 %v1658_v43  ;;  %388 = vmatpush.msrb.mxu1 %v1660_v44  ;;  %2609 = vst [vmem:[#allocation20_spill] sm:$0xff] %v1721_v62 }
  0x22   :  { %408 = vmatpush.msrb.mxu2 %v1664_v45  ;;  %428 = vmatpush.msrb.mxu3 %v1666_v46  ;;  %2610 = vst [vmem:[#allocation21_spill] sm:$0xff] %v1726_v63 }
  0x23   :  { %1258 = vmatmul.msk.f32.gmra.mxu0 %vm66_vm0, %v43_v47  ;;  %1266 = vmatmul.msk.f32.gmra.mxu1 %vm66_vm0, %v43_v47  ;;  %2611 = vst [vmem:[#allocation22_spill] sm:$0xff] %v1728_v0 }
  0x24   :  { %1274 = vmatmul.msk.f32.gmra.mxu2 %vm66_vm0, %v43_v47  ;;  %1282 = vmatmul.msk.f32.gmra.mxu3 %vm66_vm0, %v43_v47  ;;  %2612 = vst [vmem:[#allocation23_spill] sm:$0xff] %v1732_v1  ;;  %v1764_v47 = vld [vmem:[#allocation5 + $0x8] sm:$0xff] }
  0x25   :  { %369 = vmatpush.msrb.mxu0 %v1676_v48  ;;  %389 = vmatpush.msrb.mxu1 %v1678_v49  ;;  %2613 = vst [vmem:[#allocation24_spill] sm:$0xff] %v1734_v2 }
  0x26   :  { %409 = vmatpush.msrb.mxu2 %v1683_v50  ;;  %429 = vmatpush.msrb.mxu3 %v1685_v51  ;;  %2614 = vst [vmem:[#allocation25_spill] sm:$0xff] %v1738_v3 }
  0x27   :  { %370 = vmatpush.msrb.mxu0 %v1689_v52  ;;  %390 = vmatpush.msrb.mxu1 %v1691_v53  ;;  %2615 = vst [vmem:[#allocation26_spill] sm:$0xff] %v1740_v4 }
  0x28   :  { %410 = vmatpush.msrb.mxu2 %v1695_v54  ;;  %430 = vmatpush.msrb.mxu3 %v1697_v55  ;;  %2616 = vst [vmem:[#allocation27_spill] sm:$0xff] %v1744_v5 }
  0x29   :  { %371 = vmatpush.msrb.mxu0 %v1701_v56  ;;  %391 = vmatpush.msrb.mxu1 %v1703_v57  ;;  %2617 = vst [vmem:[#allocation28_spill] sm:$0xff] %v1746_v6 }
  0x2a   :  { %411 = vmatpush.msrb.mxu2 %v1707_v58  ;;  %431 = vmatpush.msrb.mxu3 %v1709_v59  ;;  %2618 = vst [vmem:[#allocation29_spill] sm:$0xff] %v1750_v7 }
  0x2b   :  { %1259 = vmatmul.msk.f32.gmra.mxu0 %vm66_vm0, %v44_v60  ;;  %1267 = vmatmul.msk.f32.gmra.mxu1 %vm66_vm0, %v44_v60  ;;  %2619 = vst [vmem:[#allocation30_spill] sm:$0xff] %v1752_v8 }
  0x2c   :  { %1275 = vmatmul.msk.f32.gmra.mxu2 %vm66_vm0, %v44_v60  ;;  %1283 = vmatmul.msk.f32.gmra.mxu3 %vm66_vm0, %v44_v60  ;;  %2620 = vst [vmem:[#allocation31_spill] sm:$0xff] %v1762_v34  ;;  %v1769_v60 = vld [vmem:[#allocation5 + $0x10] sm:$0xff] }
  0x2d   :  { %372 = vmatpush.msrb.mxu0 %v1719_v61  ;;  %392 = vmatpush.msrb.mxu1 %v1721_v62  ;;  %2621 = vst [vmem:[#allocation32_spill] sm:$0xff] %v1764_v47 }
  0x2e   :  { %412 = vmatpush.msrb.mxu2 %v1726_v63  ;;  %432 = vmatpush.msrb.mxu3 %v1728_v0  ;;  %2622 = vst [vmem:[#allocation33_spill] sm:$0xff] %v1769_v60 }
  0x2f   :  { %373 = vmatpush.msrb.mxu0 %v1732_v1  ;;  %393 = vmatpush.msrb.mxu1 %v1734_v2 }
  0x30   :  { %413 = vmatpush.msrb.mxu2 %v1738_v3  ;;  %433 = vmatpush.msrb.mxu3 %v1740_v4  ;;  %v1771_v3 = vld [vmem:[#allocation5 + $0x18] sm:$0xff] }
  0x31   :  { %374 = vmatpush.msrb.mxu0 %v1744_v5  ;;  %394 = vmatpush.msrb.mxu1 %v1746_v6  ;;  %2623 = vst [vmem:[#allocation34_spill] sm:$0xff] %v1771_v3 }
  0x32   :  { %414 = vmatpush.msrb.mxu2 %v1750_v7  ;;  %434 = vmatpush.msrb.mxu3 %v1752_v8  ;;  %v46_v8 = vld [vmem:[%s2505_s0 + $0x30] sm:$0xff] }
  0x33   :  { %1260 = vmatmul.msk.f32.gmra.mxu0 %vm66_vm0, %v45_v21  ;;  %1268 = vmatmul.msk.f32.gmra.mxu1 %vm66_vm0, %v45_v21 }
  0x34   :  { %1276 = vmatmul.msk.f32.gmra.mxu2 %vm66_vm0, %v45_v21  ;;  %1284 = vmatmul.msk.f32.gmra.mxu3 %vm66_vm0, %v45_v21  ;;  %v47_v21 = vld [vmem:[%s2505_s0 + $0x38] sm:$0xff] }
  0x35   :  { %375 = vmatpush.msrb.mxu0 %v1762_v34  ;;  %395 = vmatpush.msrb.mxu1 %v1764_v47 }
  0x36   :  { %415 = vmatpush.msrb.mxu2 %v1769_v60  ;;  %435 = vmatpush.msrb.mxu3 %v1771_v3 }
  0x37   :  { %469 = vmatpush.msra.mxu0 %v1548_v9  ;;  %489 = vmatpush.msra.mxu1 %v1550_v10 }
  0x38   :  { %509 = vmatpush.msra.mxu2 %v1554_v11  ;;  %529 = vmatpush.msra.mxu3 %v1556_v12 }
  0x39   :  { %470 = vmatpush.msra.mxu0 %v1560_v13  ;;  %490 = vmatpush.msra.mxu1 %v1562_v14 }
  0x3a   :  { %510 = vmatpush.msra.mxu2 %v1566_v15  ;;  %530 = vmatpush.msra.mxu3 %v1568_v16 }
  0x3b   :  { %1261 = vmatmul.msk.f32.gmra.mxu0 %vm66_vm0, %v46_v8  ;;  %1269 = vmatmul.msk.f32.gmra.mxu1 %vm66_vm0, %v46_v8 }
  0x3c   :  { %1277 = vmatmul.msk.f32.gmra.mxu2 %vm66_vm0, %v46_v8  ;;  %1285 = vmatmul.msk.f32.gmra.mxu3 %vm66_vm0, %v46_v8  ;;  %v1491_v8 = vmov 0.0  }
  0x3d   :  { %471 = vmatpush.msra.mxu0 %v1572_v17  ;;  %491 = vmatpush.msra.mxu1 %v1574_v18 }
  0x3e   :  { %511 = vmatpush.msra.mxu2 %v1578_v19  ;;  %531 = vmatpush.msra.mxu3 %v1580_v20 }
  0x3f   :  { %472 = vmatpush.msra.mxu0 %v1590_v22  ;;  %492 = vmatpush.msra.mxu1 %v1592_v23 }
  0x40   :  { %512 = vmatpush.msra.mxu2 %v1597_v24  ;;  %532 = vmatpush.msra.mxu3 %v1599_v25 }
  0x41   :  { %473 = vmatpush.msra.mxu0 %v1603_v26  ;;  %493 = vmatpush.msra.mxu1 %v1605_v27 }
  0x42   :  { %513 = vmatpush.msra.mxu2 %v1609_v28  ;;  %533 = vmatpush.msra.mxu3 %v1611_v29 }
  0x43   :  { %1262 = vmatmul.msk.f32.gmra.mxu0 %vm66_vm0, %v47_v21  ;;  %1270 = vmatmul.msk.f32.gmra.mxu1 %vm66_vm0, %v47_v21 }
  0x44   :  { %1278 = vmatmul.msk.f32.gmra.mxu2 %vm66_vm0, %v47_v21  ;;  %1286 = vmatmul.msk.f32.gmra.mxu3 %vm66_vm0, %v47_v21  ;;  %v2624_v21 = vld [vmem:[#allocation25_spill] sm:$0xff] }
  0x45   :  { %474 = vmatpush.msra.mxu0 %v1615_v30  ;;  %494 = vmatpush.msra.mxu1 %v1617_v31 }
  0x46   :  { %514 = vmatpush.msra.mxu2 %v1621_v32  ;;  %534 = vmatpush.msra.mxu3 %v1623_v33 }
  0x47   :  { %475 = vmatpush.msra.mxu0 %v1633_v35  ;;  %495 = vmatpush.msra.mxu1 %v1635_v36 }
  0x48   :  { %515 = vmatpush.msra.mxu2 %v1640_v37  ;;  %535 = vmatpush.msra.mxu3 %v1642_v38 }
  0x49   :  { %476 = vmatpush.msra.mxu0 %v1646_v39  ;;  %496 = vmatpush.msra.mxu1 %v1648_v40 }
  0x4a   :  { %516 = vmatpush.msra.mxu2 %v1652_v41  ;;  %536 = vmatpush.msra.mxu3 %v1654_v42 }
  0x4b   :  { %376 = vmatmul.f32.vlgmr.msrb.gmra.mxu0 %v1491_v8  ;;  %396 = vmatmul.f32.vlgmr.msrb.gmra.mxu1 %v1491_v8 }
  0x4c   :  { %416 = vmatmul.f32.vlgmr.msrb.gmra.mxu2 %v1491_v8  ;;  %436 = vmatmul.f32.vlgmr.msrb.gmra.mxu3 %v1491_v8  ;;  %v2625_v8 = vld [vmem:[#allocation30_spill] sm:$0xff] }
  0x4d   :  { %477 = vmatpush.msra.mxu0 %v1658_v43  ;;  %497 = vmatpush.msra.mxu1 %v1660_v44 }
  0x4e   :  { %517 = vmatpush.msra.mxu2 %v1664_v45  ;;  %537 = vmatpush.msra.mxu3 %v1666_v46 }
  0x4f   :  { %478 = vmatpush.msra.mxu0 %v1676_v48  ;;  %498 = vmatpush.msra.mxu1 %v1678_v49 }
  0x50   :  { %518 = vmatpush.msra.mxu2 %v1683_v50  ;;  %538 = vmatpush.msra.mxu3 %v1685_v51 }
  0x51   :  { %479 = vmatpush.msra.mxu0 %v1689_v52  ;;  %499 = vmatpush.msra.mxu1 %v1691_v53 }
  0x52   :  { %519 = vmatpush.msra.mxu2 %v1695_v54  ;;  %539 = vmatpush.msra.mxu3 %v1697_v55 }
  0x53   :  { %480 = vmatpush.msra.mxu0 %v1701_v56  ;;  %500 = vmatpush.msra.mxu1 %v1703_v57 }
  0x54   :  { %520 = vmatpush.msra.mxu2 %v1707_v58  ;;  %540 = vmatpush.msra.mxu3 %v1709_v59 }
  0x55   :  { %481 = vmatpush.msra.mxu0 %v1719_v61  ;;  %501 = vmatpush.msra.mxu1 %v1721_v62 }
  0x56   :  { %521 = vmatpush.msra.mxu2 %v1726_v63  ;;  %541 = vmatpush.msra.mxu3 %v1728_v0 }
  0x57   :  { %482 = vmatpush.msra.mxu0 %v1732_v1  ;;  %502 = vmatpush.msra.mxu1 %v1734_v2 }
  0x58   :  { %522 = vmatpush.msra.mxu2 %v2624_v21  ;;  %542 = vmatpush.msra.mxu3 %v1740_v4 }
  0x59   :  { %483 = vmatpush.msra.mxu0 %v1744_v5  ;;  %503 = vmatpush.msra.mxu1 %v1746_v6 }
  0x5a   :  { %523 = vmatpush.msra.mxu2 %v1750_v7  ;;  %543 = vmatpush.msra.mxu3 %v2625_v8 }
  0x5b   :  { %484 = vmatpush.msra.mxu0 %v1762_v34  ;;  %504 = vmatpush.msra.mxu1 %v1764_v47 }
  0x5c   :  { %524 = vmatpush.msra.mxu2 %v1769_v60  ;;  %544 = vmatpush.msra.mxu3 %v1771_v3 }
  0x5d   :  { %578 = vmatpush.msrb.mxu0 %v1548_v9  ;;  %598 = vmatpush.msrb.mxu1 %v1550_v10 }
  0x5e   :  { %618 = vmatpush.msrb.mxu2 %v1554_v11  ;;  %638 = vmatpush.msrb.mxu3 %v1556_v12 }
  0x5f   :  { %579 = vmatpush.msrb.mxu0 %v1560_v13  ;;  %599 = vmatpush.msrb.mxu1 %v1562_v14 }
  0x60   :  { %619 = vmatpush.msrb.mxu2 %v1566_v15  ;;  %639 = vmatpush.msrb.mxu3 %v1568_v16 }
  0x61   :  { %580 = vmatpush.msrb.mxu0 %v1572_v17  ;;  %600 = vmatpush.msrb.mxu1 %v1574_v18 }
  0x62   :  { %620 = vmatpush.msrb.mxu2 %v1578_v19  ;;  %640 = vmatpush.msrb.mxu3 %v1580_v20 }
  0x63   :  { %581 = vmatpush.msrb.mxu0 %v1590_v22  ;;  %601 = vmatpush.msrb.mxu1 %v1592_v23 }
  0x64   :  { %621 = vmatpush.msrb.mxu2 %v1597_v24  ;;  %641 = vmatpush.msrb.mxu3 %v1599_v25 }
  0x65   :  { %582 = vmatpush.msrb.mxu0 %v1603_v26  ;;  %602 = vmatpush.msrb.mxu1 %v1605_v27 }
  0x66   :  { %622 = vmatpush.msrb.mxu2 %v1609_v28  ;;  %642 = vmatpush.msrb.mxu3 %v1611_v29 }
  0x67   :  { %583 = vmatpush.msrb.mxu0 %v1615_v30  ;;  %603 = vmatpush.msrb.mxu1 %v1617_v31 }
  0x68   :  { %623 = vmatpush.msrb.mxu2 %v1621_v32  ;;  %643 = vmatpush.msrb.mxu3 %v1623_v33 }
  0x69   :  { %584 = vmatpush.msrb.mxu0 %v1633_v35  ;;  %604 = vmatpush.msrb.mxu1 %v1635_v36 }
  0x6a   :  { %624 = vmatpush.msrb.mxu2 %v1640_v37  ;;  %644 = vmatpush.msrb.mxu3 %v1642_v38 }
  0x6b   :  { %585 = vmatpush.msrb.mxu0 %v1646_v39  ;;  %605 = vmatpush.msrb.mxu1 %v1648_v40 }
  0x6c   :  { %625 = vmatpush.msrb.mxu2 %v1652_v41  ;;  %645 = vmatpush.msrb.mxu3 %v1654_v42 }
  0x6d   :  { %586 = vmatpush.msrb.mxu0 %v1658_v43  ;;  %606 = vmatpush.msrb.mxu1 %v1660_v44 }
  0x6e   :  { %626 = vmatpush.msrb.mxu2 %v1664_v45  ;;  %646 = vmatpush.msrb.mxu3 %v1666_v46 }
  0x6f   :  { %587 = vmatpush.msrb.mxu0 %v1676_v48  ;;  %607 = vmatpush.msrb.mxu1 %v1678_v49 }
  0x70   :  { %627 = vmatpush.msrb.mxu2 %v1683_v50  ;;  %647 = vmatpush.msrb.mxu3 %v1685_v51 }
  0x71   :  { %588 = vmatpush.msrb.mxu0 %v1689_v52  ;;  %608 = vmatpush.msrb.mxu1 %v1691_v53 }
  0x72   :  { %628 = vmatpush.msrb.mxu2 %v1695_v54  ;;  %648 = vmatpush.msrb.mxu3 %v1697_v55 }
  0x73   :  { %589 = vmatpush.msrb.mxu0 %v1701_v56  ;;  %609 = vmatpush.msrb.mxu1 %v1703_v57 }
  0x74   :  { %629 = vmatpush.msrb.mxu2 %v1707_v58  ;;  %649 = vmatpush.msrb.mxu3 %v1709_v59 }
  0x75   :  { %590 = vmatpush.msrb.mxu0 %v1719_v61  ;;  %610 = vmatpush.msrb.mxu1 %v1721_v62 }
  0x76   :  { %630 = vmatpush.msrb.mxu2 %v1726_v63  ;;  %650 = vmatpush.msrb.mxu3 %v1728_v0 }
  0x77   :  { %591 = vmatpush.msrb.mxu0 %v1732_v1  ;;  %611 = vmatpush.msrb.mxu1 %v1734_v2 }
  0x78   :  { %631 = vmatpush.msrb.mxu2 %v2624_v21  ;;  %651 = vmatpush.msrb.mxu3 %v1740_v4 }
  0x79   :  { %592 = vmatpush.msrb.mxu0 %v1744_v5  ;;  %612 = vmatpush.msrb.mxu1 %v1746_v6  ;;  %v56_v5 = vld [vmem:[%s2508_s3] sm:$0xf]  ;;  %s1492_s3 = smov [#allocation8]  }
  0x7a   :  { %632 = vmatpush.msrb.mxu2 %v1750_v7  ;;  %652 = vmatpush.msrb.mxu3 %v2625_v8  ;;  %v58_v4 = vperm.slane %v56_v5, 0  ;;  %v59_v6 = vperm.slane %v56_v5, 1  ;;  %s1236_s27 = sshll.u32 %s1492_s3, 4  ;;  %s1237_s27 = int_to_ptr.vmem [resolvable:$true] %s1236_s27 }
  0x7b   :  { %593 = vmatpush.msrb.mxu0 %v1762_v34  ;;  %613 = vmatpush.msrb.mxu1 %v1764_v47 }
  0x7c   :  { %633 = vmatpush.msrb.mxu2 %v1769_v60  ;;  %653 = vmatpush.msrb.mxu3 %v1771_v3  ;;  %v1932_v60 = vperm.slane %v56_v5, 2  ;;  %v1934_v3 = vperm.slane %v56_v5, 3 }
  0x88   :  { %v108_v2 = vpop.f32.mrf.mxu0  ;;  %v149_v21 = vpop.f32.mrf.mxu1 }
  0x8f   :  { %v1924_v1 = vpop.f32.mrf.mxu2  ;;  %v1926_v7 = vpop.f32.mrf.mxu3 }
  0x90   :  { %v111_v8 = vpop.f32.mrf.mxu0  ;;  %v152_v34 = vpop.f32.mrf.mxu1 }
  0x91   :  { %v1928_v0 = vadd.f32 %v111_v8, %v58_v4  ;;  %v1930_v47 = vadd.f32 %v152_v34, %v59_v6 }
  0x93   :  { %2626 = vst [vmem:[#allocation35_spill] sm:$0xff] %v1928_v0 }
  0x94   :  { %2627 = vst [vmem:[#allocation36_spill] sm:$0xff] %v1930_v47 }
  0x97   :  { %v193_v63 = vpop.f32.mrf.mxu2  ;;  %v234_v62 = vpop.f32.mrf.mxu3 }
  0x98   :  { %v1937_v61 = vadd.f32 %v193_v63, %v1932_v60  ;;  %v1940_v59 = vadd.f32 %v234_v62, %v1934_v3  ;;  %v114_v58 = vpop.f32.mrf.mxu0  ;;  %v155_v57 = vpop.f32.mrf.mxu1 }
  0x99   :  { %v1942_v56 = vadd.f32 %v114_v58, %v58_v4  ;;  %v1944_v8 = vadd.f32 %v155_v57, %v59_v6 }
  0x9a   :  { %2628 = vst [vmem:[#allocation37_spill] sm:$0xff] %v1937_v61 }
  0x9b   :  { %2629 = vst [vmem:[#allocation38_spill] sm:$0xff] %v1940_v59 }
  0x9c   :  { %2630 = vst [vmem:[#allocation39_spill] sm:$0xff] %v1942_v56 }
  0x9d   :  { %2631 = vst [vmem:[#allocation40_spill] sm:$0xff] %v1944_v8 }
  0x9f   :  { %v196_v34 = vpop.f32.mrf.mxu2  ;;  %v237_v47 = vpop.f32.mrf.mxu3 }
  0xa0   :  { %v1947_v0 = vadd.f32 %v196_v34, %v1932_v60  ;;  %v1950_v5 = vadd.f32 %v237_v47, %v1934_v3  ;;  %v117_v55 = vpop.f32.mrf.mxu0  ;;  %v158_v63 = vpop.f32.mrf.mxu1 }
  0xa1   :  { %v1952_v61 = vadd.f32 %v117_v55, %v58_v4  ;;  %v1954_v62 = vadd.f32 %v158_v63, %v59_v6 }
  0xa2   :  { %2632 = vst [vmem:[#allocation41_spill] sm:$0xff] %v1947_v0 }
  0xa3   :  { %2633 = vst [vmem:[#allocation42_spill] sm:$0xff] %v1950_v5 }
  0xa4   :  { %2634 = vst [vmem:[#allocation43_spill] sm:$0xff] %v1952_v61 }
  0xa5   :  { %2635 = vst [vmem:[#allocation44_spill] sm:$0xff] %v1954_v62 }
  0xa7   :  { %v199_v59 = vpop.f32.mrf.mxu2  ;;  %v240_v54 = vpop.f32.mrf.mxu3 }
  0xa8   :  { %v1957_v58 = vadd.f32 %v199_v59, %v1932_v60  ;;  %v1960_v57 = vadd.f32 %v240_v54, %v1934_v3  ;;  %v120_v8 = vpop.f32.mrf.mxu0  ;;  %v161_v34 = vpop.f32.mrf.mxu1 }
  0xa9   :  { %v1962_v0 = vadd.f32 %v120_v8, %v58_v4  ;;  %v1964_v47 = vadd.f32 %v161_v34, %v59_v6 }
  0xaa   :  { %2636 = vst [vmem:[#allocation45_spill] sm:$0xff] %v1957_v58 }
  0xab   :  { %2637 = vst [vmem:[#allocation46_spill] sm:$0xff] %v1960_v57 }
  0xac   :  { %2638 = vst [vmem:[#allocation47_spill] sm:$0xff] %v1962_v0 }
  0xad   :  { %2639 = vst [vmem:[#allocation48_spill] sm:$0xff] %v1964_v47 }
  0xaf   :  { %v202_v5 = vpop.f32.mrf.mxu2  ;;  %v243_v56 = vpop.f32.mrf.mxu3 }
  0xb0   :  { %v1967_v55 = vadd.f32 %v202_v5, %v1932_v60  ;;  %v1970_v63 = vadd.f32 %v243_v56, %v1934_v3  ;;  %v123_v62 = vpop.f32.mrf.mxu0  ;;  %v164_v59 = vpop.f32.mrf.mxu1 }
  0xb1   :  { %v1972_v58 = vadd.f32 %v123_v62, %v58_v4  ;;  %v1974_v54 = vadd.f32 %v164_v59, %v59_v6 }
  0xb2   :  { %2640 = vst [vmem:[#allocation49_spill] sm:$0xff] %v1967_v55 }
  0xb3   :  { %2641 = vst [vmem:[#allocation50_spill] sm:$0xff] %v1970_v63 }
  0xb4   :  { %2642 = vst [vmem:[#allocation51_spill] sm:$0xff] %v1972_v58  ;;  %v150_v58 = vadd.f32 %v149_v21, %v59_v6 }
  0xb5   :  { %2643 = vst [vmem:[#allocation52_spill] sm:$0xff] %v1974_v54 }
  0xb7   :  { %v205_v57 = vpop.f32.mrf.mxu2  ;;  %v246_v61 = vpop.f32.mrf.mxu3 }
  0xb8   :  { %v1977_v8 = vadd.f32 %v205_v57, %v1932_v60  ;;  %v1980_v34 = vadd.f32 %v246_v61, %v1934_v3  ;;  %v126_v47 = vpop.f32.mrf.mxu0  ;;  %v167_v5 = vpop.f32.mrf.mxu1 }
  0xb9   :  { %v1982_v55 = vadd.f32 %v126_v47, %v58_v4  ;;  %v1984_v56 = vadd.f32 %v167_v5, %v59_v6 }
  0xba   :  { %2644 = vst [vmem:[#allocation53_spill] sm:$0xff] %v1977_v8 }
  0xbb   :  { %2645 = vst [vmem:[#allocation54_spill] sm:$0xff] %v1980_v34  ;;  %v109_v34 = vadd.f32 %v108_v2, %v58_v4  ;;  %v232_v2 = vadd.f32 %v1926_v7, %v1934_v3 }
  0xbc   :  { %2646 = vst [vmem:[#allocation55_spill] sm:$0xff] %v1982_v55 }
  0xbd   :  { %2647 = vst [vmem:[#allocation56_spill] sm:$0xff] %v1984_v56 }
  0xbf   :  { %v208_v63 = vpop.f32.mrf.mxu2  ;;  %v249_v0 = vpop.f32.mrf.mxu3 }
  0xc0   :  { %v1987_v62 = vadd.f32 %v208_v63, %v1932_v60  ;;  %v1990_v59 = vadd.f32 %v249_v0, %v1934_v3  ;;  %v129_v54 = vpop.f32.mrf.mxu0  ;;  %v170_v57 = vpop.f32.mrf.mxu1 }
  0xc1   :  { %v1992_v8 = vadd.f32 %v129_v54, %v58_v4  ;;  %v1994_v61 = vadd.f32 %v170_v57, %v59_v6  ;;  %v191_v54 = vadd.f32 %v1924_v1, %v1932_v60 }
  0xc2   :  { %2648 = vst [vmem:[#allocation57_spill] sm:$0xff] %v1987_v62 }
  0xc3   :  { %2649 = vst [vmem:[#allocation58_spill] sm:$0xff] %v1990_v59 }
  0xc4   :  { %2650 = vst [vmem:[#allocation59_spill] sm:$0xff] %v1992_v8  ;;  %v2676_v8 = vld [vmem:[#allocation33_spill] sm:$0xff] }
  0xc5   :  { %2651 = vst [vmem:[#allocation60_spill] sm:$0xff] %v1994_v61  ;;  %v2675_v61 = vld [vmem:[#allocation32_spill] sm:$0xff] }
  0xc7   :  { %v211_v47 = vpop.f32.mrf.mxu2  ;;  %v252_v55 = vpop.f32.mrf.mxu3 }
  0xc8   :  { %v1997_v5 = vadd.f32 %v211_v47, %v1932_v60  ;;  %v2000_v56 = vadd.f32 %v252_v55, %v1934_v3  ;;  %v377_v63 = vpop.f32.mrf.mxu0  ;;  %v397_v62 = vpop.f32.mrf.mxu1 }
  0xc9   :  { %v440_v0 = vadd.f32 %v377_v63, %v109_v34  ;;  %v441_v59 = vadd.f32 %v397_v62, %v150_v58 }
  0xca   :  { %2652 = vst [vmem:[#allocation61_spill] sm:$0xff] %v1997_v5  ;;  %v2674_v5 = vld [vmem:[#allocation31_spill] sm:$0xff] }
  0xcb   :  { %2653 = vst [vmem:[#allocation62_spill] sm:$0xff] %v2000_v56  ;;  %v444_v53 = vmul.f32 0.5, %v440_v0  ;;  %v448_v52 = vmul.f32 0.5, %v441_v59 }
  0xcd   :  { %1292 = vtanh.f32 %v444_v53 }
  0xce   :  { %1294 = vtanh.f32 %v448_v52 }
  0xcf   :  { %v417_v4 = vpop.f32.mrf.mxu2  ;;  %v437_v6 = vpop.f32.mrf.mxu3 }
  0xd0   :  { %v442_v21 = vadd.f32 %v417_v4, %v191_v54  ;;  %v443_v57 = vadd.f32 %v437_v6, %v232_v2  ;;  %v2655_v2 = vld [vmem:[#allocation12_spill] sm:$0xff]  ;;  %v2656_v4 = vld [vmem:[#allocation13_spill] sm:$0xff]  ;;  %v2657_v6 = vld [vmem:[#allocation14_spill] sm:$0xff] }
  0xd2   :  { %1296 = vtanh.f32 %v442_v21  ;;  %v453_v55 = vmul.f32 0.5, %v443_v57  ;;  %v2658_v21 = vld [vmem:[#allocation15_spill] sm:$0xff]  ;;  %v2659_v57 = vld [vmem:[#allocation16_spill] sm:$0xff] }
  0xd3   :  { %v1293_v47 = vpop.eup %1292 }
  0xd4   :  { %v1295_v56 = vpop.eup %1294  ;;  %v446_v34 = vadd.f32 1.0, %v1293_v47  ;;  %1298 = vtanh.f32 %v453_v55  ;;  %v2660_v55 = vld [vmem:[#allocation17_spill] sm:$0xff]  ;;  %v2661_v47 = vld [vmem:[#allocation18_spill] sm:$0xff] }
  0xd5   :  { %v450_v58 = vadd.f32 1.0, %v1295_v56  ;;  %v2654_v56 = vld [vmem:[#allocation11_spill] sm:$0xff] }
  0xd6   :  { %v447_v62 = vmul.f32 0.5, %v446_v34  ;;  %v2662_v34 = vld [vmem:[#allocation19_spill] sm:$0xff] }
  0xd7   :  { %v451_v53 = vmul.f32 0.5, %v450_v58  ;;  %v2663_v58 = vld [vmem:[#allocation20_spill] sm:$0xff] }
  0xd8   :  { %v1297_v59 = vpop.eup %1296 }
  0xd9   :  { %v457_v63 = vmul.f32 0.0, %v451_v53  ;;  %v458_v1 = vmul.f32 %v1297_v59, %v447_v62  ;;  %v2664_v62 = vld [vmem:[#allocation21_spill] sm:$0xff]  ;;  %v2665_v53 = vld [vmem:[#allocation22_spill] sm:$0xff]  ;;  %v2666_v59 = vld [vmem:[#allocation23_spill] sm:$0xff] }
  0xda   :  { %v1299_v60 = vpop.eup %1298 }
  0xdb   :  { %v2006_v0 = vadd.f32 %v458_v1, %v457_v63  ;;  %v455_v52 = vadd.f32 1.0, %v1299_v60  ;;  %v2667_v63 = vld [vmem:[#allocation24_spill] sm:$0xff]  ;;  %v2668_v1 = vld [vmem:[#allocation25_spill] sm:$0xff]  ;;  %v2669_v60 = vld [vmem:[#allocation26_spill] sm:$0xff] }
  0xdd   :  { %1300 = vtanh.f32 %v2006_v0  ;;  %v456_v3 = vmul.f32 0.5, %v455_v52  ;;  %v2670_v52 = vld [vmem:[#allocation27_spill] sm:$0xff] }
  0xe3   :  { %v1301_v7 = vpop.eup %1300 }
  0xe4   :  { %v461_v54 = vmul.f32 %v1301_v7, %v456_v3  ;;  %v2671_v3 = vld [vmem:[#allocation28_spill] sm:$0xff]  ;;  %v2672_v7 = vld [vmem:[#allocation29_spill] sm:$0xff] }
  0xe6   :  { %485 = vmatmul.f32.vlgmr.msra.gmra.mxu0 %v461_v54  ;;  %505 = vmatmul.f32.vlgmr.msra.gmra.mxu1 %v461_v54 }
  0xe7   :  { %525 = vmatmul.f32.vlgmr.msra.gmra.mxu2 %v461_v54  ;;  %545 = vmatmul.f32.vlgmr.msra.gmra.mxu3 %v461_v54  ;;  %v2673_v54 = vld [vmem:[#allocation30_spill] sm:$0xff] }
  0xe8   :  { %687 = vmatpush.msra.mxu0 %v1548_v9  ;;  %707 = vmatpush.msra.mxu1 %v1550_v10 }
  0xe9   :  { %727 = vmatpush.msra.mxu2 %v1554_v11  ;;  %747 = vmatpush.msra.mxu3 %v1556_v12 }
  0xea   :  { %688 = vmatpush.msra.mxu0 %v1560_v13  ;;  %708 = vmatpush.msra.mxu1 %v1562_v14 }
  0xeb   :  { %728 = vmatpush.msra.mxu2 %v1566_v15  ;;  %748 = vmatpush.msra.mxu3 %v1568_v16 }
  0xec   :  { %689 = vmatpush.msra.mxu0 %v1572_v17  ;;  %709 = vmatpush.msra.mxu1 %v1574_v18 }
  0xed   :  { %729 = vmatpush.msra.mxu2 %v1578_v19  ;;  %749 = vmatpush.msra.mxu3 %v1580_v20 }
  0xee   :  { %690 = vmatpush.msra.mxu0 %v1590_v22  ;;  %710 = vmatpush.msra.mxu1 %v1592_v23 }
  0xef   :  { %730 = vmatpush.msra.mxu2 %v1597_v24  ;;  %750 = vmatpush.msra.mxu3 %v1599_v25 }
  0xf0   :  { %691 = vmatpush.msra.mxu0 %v1603_v26  ;;  %711 = vmatpush.msra.mxu1 %v1605_v27 }
  0xf1   :  { %731 = vmatpush.msra.mxu2 %v1609_v28  ;;  %751 = vmatpush.msra.mxu3 %v1611_v29 }
  0xf2   :  { %692 = vmatpush.msra.mxu0 %v1615_v30  ;;  %712 = vmatpush.msra.mxu1 %v1617_v31 }
  0xf3   :  { %732 = vmatpush.msra.mxu2 %v1621_v32  ;;  %752 = vmatpush.msra.mxu3 %v1623_v33 }
  0xf4   :  { %693 = vmatpush.msra.mxu0 %v1633_v35  ;;  %713 = vmatpush.msra.mxu1 %v1635_v36 }
  0xf5   :  { %733 = vmatpush.msra.mxu2 %v1640_v37  ;;  %753 = vmatpush.msra.mxu3 %v1642_v38 }
  0xf6   :  { %694 = vmatpush.msra.mxu0 %v1646_v39  ;;  %714 = vmatpush.msra.mxu1 %v1648_v40 }
  0xf7   :  { %734 = vmatpush.msra.mxu2 %v1652_v41  ;;  %754 = vmatpush.msra.mxu3 %v1654_v42 }
  0xf8   :  { %695 = vmatpush.msra.mxu0 %v1658_v43  ;;  %715 = vmatpush.msra.mxu1 %v1660_v44 }
  0xf9   :  { %735 = vmatpush.msra.mxu2 %v1664_v45  ;;  %755 = vmatpush.msra.mxu3 %v1666_v46 }
  0xfa   :  { %696 = vmatpush.msra.mxu0 %v1676_v48  ;;  %716 = vmatpush.msra.mxu1 %v1678_v49 }
  0xfb   :  { %736 = vmatpush.msra.mxu2 %v1683_v50  ;;  %756 = vmatpush.msra.mxu3 %v1685_v51 }
  0xfc   :  { %697 = vmatpush.msra.mxu0 %v2654_v56  ;;  %717 = vmatpush.msra.mxu1 %v2655_v2 }
  0xfd   :  { %737 = vmatpush.msra.mxu2 %v2656_v4  ;;  %757 = vmatpush.msra.mxu3 %v2657_v6 }
  0xfe   :  { %698 = vmatpush.msra.mxu0 %v2658_v21  ;;  %718 = vmatpush.msra.mxu1 %v2659_v57 }
  0xff   :  { %738 = vmatpush.msra.mxu2 %v2660_v55  ;;  %758 = vmatpush.msra.mxu3 %v2661_v47  ;;  %v2681_v47 = vld [vmem:[#allocation38_spill] sm:$0xff] }
 0x100   :  { %699 = vmatpush.msra.mxu0 %v2662_v34  ;;  %719 = vmatpush.msra.mxu1 %v2663_v58  ;;  %v2680_v34 = vld [vmem:[#allocation37_spill] sm:$0xff] }
 0x101   :  { %739 = vmatpush.msra.mxu2 %v2664_v62  ;;  %759 = vmatpush.msra.mxu3 %v2665_v53  ;;  %v2678_v53 = vld [vmem:[#allocation35_spill] sm:$0xff]  ;;  %v2679_v62 = vld [vmem:[#allocation36_spill] sm:$0xff] }
 0x102   :  { %700 = vmatpush.msra.mxu0 %v2666_v59  ;;  %720 = vmatpush.msra.mxu1 %v2667_v63  ;;  %v2677_v59 = vld [vmem:[#allocation34_spill] sm:$0xff] }
 0x103   :  { %740 = vmatpush.msra.mxu2 %v2668_v1  ;;  %760 = vmatpush.msra.mxu3 %v2669_v60 }
 0x104   :  { %701 = vmatpush.msra.mxu0 %v2670_v52  ;;  %721 = vmatpush.msra.mxu1 %v2671_v3 }
 0x105   :  { %741 = vmatpush.msra.mxu2 %v2672_v7  ;;  %761 = vmatpush.msra.mxu3 %v2673_v54 }
 0x106   :  { %702 = vmatpush.msra.mxu0 %v2674_v5  ;;  %722 = vmatpush.msra.mxu1 %v2675_v61 }
 0x107   :  { %742 = vmatpush.msra.mxu2 %v2676_v8  ;;  %762 = vmatpush.msra.mxu3 %v2677_v59 }
 0x163   :  { %v486_v63 = vpop.f32.mrf.mxu0  ;;  %v506_v1 = vpop.f32.mrf.mxu1 }
 0x164   :  { %v549_v60 = vadd.f32 %v486_v63, %v2678_v53  ;;  %v550_v52 = vadd.f32 %v506_v1, %v2679_v62 }
 0x166   :  { %v553_v58 = vmul.f32 0.5, %v549_v60  ;;  %v557_v3 = vmul.f32 0.5, %v550_v52 }
 0x168   :  { %1302 = vtanh.f32 %v553_v58 }
 0x169   :  { %1304 = vtanh.f32 %v557_v3  ;;  %v2153_v3 = vld [vmem:[#allocation5 + $0x1e0] sm:$0xff] }
 0x16a   :  { %v526_v7 = vpop.f32.mrf.mxu2  ;;  %v546_v54 = vpop.f32.mrf.mxu3 }
 0x16b   :  { %v551_v5 = vadd.f32 %v526_v7, %v2680_v34  ;;  %v552_v61 = vadd.f32 %v546_v54, %v2681_v47  ;;  %v2156_v7 = vld [vmem:[#allocation5 + $0x1e8] sm:$0xff]  ;;  %v2159_v54 = vld [vmem:[#allocation5 + $0x1f0] sm:$0xff] }
 0x16d   :  { %1306 = vtanh.f32 %v551_v5  ;;  %v562_v8 = vmul.f32 0.5, %v552_v61 }
 0x16e   :  { %v1303_v55 = vpop.eup %1302 }
 0x16f   :  { %v1305_v59 = vpop.eup %1304  ;;  %v555_v57 = vadd.f32 1.0, %v1303_v55  ;;  %1308 = vtanh.f32 %v562_v8 }
 0x170   :  { %v559_v21 = vadd.f32 1.0, %v1305_v59 }
 0x171   :  { %v556_v53 = vmul.f32 0.5, %v555_v57 }
 0x172   :  { %v560_v63 = vmul.f32 0.5, %v559_v21 }
 0x173   :  { %v1307_v62 = vpop.eup %1306 }
 0x174   :  { %v566_v1 = vmul.f32 %v560_v63, %v2006_v0  ;;  %v567_v58 = vmul.f32 %v1307_v62, %v556_v53  ;;  %v2162_v53 = vld [vmem:[#allocation5 + $0x1f8] sm:$0xff]  ;;  %v2165_v63 = vld [vmem:[#allocation5 + $0x1c0] sm:$0xff]  ;;  %v2168_v62 = vld [vmem:[#allocation5 + $0x1c8] sm:$0xff] }
 0x175   :  { %v1309_v60 = vpop.eup %1308 }
 0x176   :  { %v2078_v52 = vadd.f32 %v567_v58, %v566_v1  ;;  %v564_v34 = vadd.f32 1.0, %v1309_v60  ;;  %v2171_v1 = vld [vmem:[#allocation5 + $0x1d0] sm:$0xff]  ;;  %v2174_v58 = vld [vmem:[#allocation5 + $0x1d8] sm:$0xff]  ;;  %v2177_v60 = vld [vmem:[#allocation5 + $0x1a0] sm:$0xff] }
 0x178   :  { %1310 = vtanh.f32 %v2078_v52  ;;  %v565_v47 = vmul.f32 0.5, %v564_v34  ;;  %v2183_v34 = vld [vmem:[#allocation5 + $0x1b0] sm:$0xff] }
 0x17e   :  { %v1311_v5 = vpop.eup %1310 }
 0x17f   :  { %v570_v61 = vmul.f32 %v1311_v5, %v565_v47  ;;  %v2186_v47 = vld [vmem:[#allocation5 + $0x1b8] sm:$0xff]  ;;  %v2189_v5 = vld [vmem:[#allocation5 + $0x180] sm:$0xff] }
 0x181   :  { %594 = vmatmul.f32.vlgmr.msrb.gmra.mxu0 %v570_v61  ;;  %614 = vmatmul.f32.vlgmr.msrb.gmra.mxu1 %v570_v61 }
 0x182   :  { %634 = vmatmul.f32.vlgmr.msrb.gmra.mxu2 %v570_v61  ;;  %654 = vmatmul.f32.vlgmr.msrb.gmra.mxu3 %v570_v61  ;;  %v2192_v61 = vld [vmem:[#allocation5 + $0x188] sm:$0xff] }
 0x183   :  { %796 = vmatpush.msrb.mxu0 %v1548_v9  ;;  %816 = vmatpush.msrb.mxu1 %v1550_v10  ;;  %v2682_v9 = vld [vmem:[#allocation15_spill] sm:$0xff]  ;;  %v2683_v10 = vld [vmem:[#allocation16_spill] sm:$0xff] }
 0x184   :  { %836 = vmatpush.msrb.mxu2 %v1554_v11  ;;  %856 = vmatpush.msrb.mxu3 %v1556_v12  ;;  %v2684_v11 = vld [vmem:[#allocation17_spill] sm:$0xff]  ;;  %v2685_v12 = vld [vmem:[#allocation18_spill] sm:$0xff] }
 0x185   :  { %797 = vmatpush.msrb.mxu0 %v1560_v13  ;;  %817 = vmatpush.msrb.mxu1 %v1562_v14  ;;  %v2686_v13 = vld [vmem:[#allocation19_spill] sm:$0xff]  ;;  %v2687_v14 = vld [vmem:[#allocation20_spill] sm:$0xff] }
 0x186   :  { %837 = vmatpush.msrb.mxu2 %v1566_v15  ;;  %857 = vmatpush.msrb.mxu3 %v1568_v16  ;;  %v2688_v15 = vld [vmem:[#allocation21_spill] sm:$0xff]  ;;  %v2689_v16 = vld [vmem:[#allocation22_spill] sm:$0xff] }
 0x187   :  { %798 = vmatpush.msrb.mxu0 %v1572_v17  ;;  %818 = vmatpush.msrb.mxu1 %v1574_v18  ;;  %v2690_v17 = vld [vmem:[#allocation23_spill] sm:$0xff]  ;;  %v2691_v18 = vld [vmem:[#allocation24_spill] sm:$0xff] }
 0x188   :  { %838 = vmatpush.msrb.mxu2 %v1578_v19  ;;  %858 = vmatpush.msrb.mxu3 %v1580_v20  ;;  %v2692_v19 = vld [vmem:[#allocation25_spill] sm:$0xff]  ;;  %v2693_v20 = vld [vmem:[#allocation26_spill] sm:$0xff] }
 0x189   :  { %799 = vmatpush.msrb.mxu0 %v1590_v22  ;;  %819 = vmatpush.msrb.mxu1 %v1592_v23  ;;  %v2694_v22 = vld [vmem:[#allocation27_spill] sm:$0xff]  ;;  %v2695_v23 = vld [vmem:[#allocation28_spill] sm:$0xff] }
 0x18a   :  { %839 = vmatpush.msrb.mxu2 %v1597_v24  ;;  %859 = vmatpush.msrb.mxu3 %v1599_v25  ;;  %v2696_v24 = vld [vmem:[#allocation29_spill] sm:$0xff]  ;;  %v2697_v25 = vld [vmem:[#allocation30_spill] sm:$0xff] }
 0x18b   :  { %800 = vmatpush.msrb.mxu0 %v1603_v26  ;;  %820 = vmatpush.msrb.mxu1 %v1605_v27  ;;  %v2698_v26 = vld [vmem:[#allocation31_spill] sm:$0xff]  ;;  %v2699_v27 = vld [vmem:[#allocation32_spill] sm:$0xff] }
 0x18c   :  { %840 = vmatpush.msrb.mxu2 %v1609_v28  ;;  %860 = vmatpush.msrb.mxu3 %v1611_v29  ;;  %v2700_v28 = vld [vmem:[#allocation33_spill] sm:$0xff]  ;;  %v2701_v29 = vld [vmem:[#allocation34_spill] sm:$0xff] }
 0x18d   :  { %801 = vmatpush.msrb.mxu0 %v1615_v30  ;;  %821 = vmatpush.msrb.mxu1 %v1617_v31 }
 0x18e   :  { %841 = vmatpush.msrb.mxu2 %v1621_v32  ;;  %861 = vmatpush.msrb.mxu3 %v1623_v33  ;;  %v2702_v32 = vld [vmem:[#allocation39_spill] sm:$0xff] }
 0x18f   :  { %802 = vmatpush.msrb.mxu0 %v1633_v35  ;;  %822 = vmatpush.msrb.mxu1 %v1635_v36  ;;  %v2703_v35 = vld [vmem:[#allocation40_spill] sm:$0xff] }
 0x190   :  { %842 = vmatpush.msrb.mxu2 %v1640_v37  ;;  %862 = vmatpush.msrb.mxu3 %v1642_v38 }
 0x191   :  { %803 = vmatpush.msrb.mxu0 %v1646_v39  ;;  %823 = vmatpush.msrb.mxu1 %v1648_v40 }
 0x192   :  { %843 = vmatpush.msrb.mxu2 %v1652_v41  ;;  %863 = vmatpush.msrb.mxu3 %v1654_v42  ;;  %v2704_v41 = vld [vmem:[#allocation41_spill] sm:$0xff] }
 0x193   :  { %804 = vmatpush.msrb.mxu0 %v1658_v43  ;;  %824 = vmatpush.msrb.mxu1 %v1660_v44  ;;  %v2705_v43 = vld [vmem:[#allocation42_spill] sm:$0xff] }
 0x194   :  { %844 = vmatpush.msrb.mxu2 %v1664_v45  ;;  %864 = vmatpush.msrb.mxu3 %v1666_v46 }
 0x195   :  { %805 = vmatpush.msrb.mxu0 %v1676_v48  ;;  %825 = vmatpush.msrb.mxu1 %v1678_v49 }
 0x196   :  { %845 = vmatpush.msrb.mxu2 %v1683_v50  ;;  %865 = vmatpush.msrb.mxu3 %v1685_v51 }
 0x197   :  { %806 = vmatpush.msrb.mxu0 %v2654_v56  ;;  %826 = vmatpush.msrb.mxu1 %v2655_v2 }
 0x198   :  { %846 = vmatpush.msrb.mxu2 %v2656_v4  ;;  %866 = vmatpush.msrb.mxu3 %v2657_v6 }
 0x199   :  { %807 = vmatpush.msrb.mxu0 %v2682_v9  ;;  %827 = vmatpush.msrb.mxu1 %v2683_v10  ;;  %v2195_v9 = vld [vmem:[#allocation5 + $0x190] sm:$0xff]  ;;  %v2198_v10 = vld [vmem:[#allocation5 + $0x198] sm:$0xff] }
 0x19a   :  { %847 = vmatpush.msrb.mxu2 %v2684_v11  ;;  %867 = vmatpush.msrb.mxu3 %v2685_v12  ;;  %v2201_v11 = vld [vmem:[#allocation5 + $0x160] sm:$0xff]  ;;  %v2204_v12 = vld [vmem:[#allocation5 + $0x168] sm:$0xff] }
 0x19b   :  { %808 = vmatpush.msrb.mxu0 %v2686_v13  ;;  %828 = vmatpush.msrb.mxu1 %v2687_v14  ;;  %v2207_v13 = vld [vmem:[#allocation5 + $0x170] sm:$0xff]  ;;  %v2210_v14 = vld [vmem:[#allocation5 + $0x178] sm:$0xff] }
 0x19c   :  { %848 = vmatpush.msrb.mxu2 %v2688_v15  ;;  %868 = vmatpush.msrb.mxu3 %v2689_v16  ;;  %v2213_v15 = vld [vmem:[#allocation5 + $0x140] sm:$0xff]  ;;  %v2216_v16 = vld [vmem:[#allocation5 + $0x148] sm:$0xff] }
 0x19d   :  { %809 = vmatpush.msrb.mxu0 %v2690_v17  ;;  %829 = vmatpush.msrb.mxu1 %v2691_v18  ;;  %v2219_v17 = vld [vmem:[#allocation5 + $0x150] sm:$0xff]  ;;  %v2222_v18 = vld [vmem:[#allocation5 + $0x158] sm:$0xff] }
 0x19e   :  { %849 = vmatpush.msrb.mxu2 %v2692_v19  ;;  %869 = vmatpush.msrb.mxu3 %v2693_v20  ;;  %v2225_v19 = vld [vmem:[#allocation5 + $0x120] sm:$0xff]  ;;  %v2228_v20 = vld [vmem:[#allocation5 + $0x128] sm:$0xff] }
 0x19f   :  { %810 = vmatpush.msrb.mxu0 %v2694_v22  ;;  %830 = vmatpush.msrb.mxu1 %v2695_v23  ;;  %v2231_v22 = vld [vmem:[#allocation5 + $0x130] sm:$0xff]  ;;  %v2234_v23 = vld [vmem:[#allocation5 + $0x138] sm:$0xff] }
 0x1a0   :  { %850 = vmatpush.msrb.mxu2 %v2696_v24  ;;  %870 = vmatpush.msrb.mxu3 %v2697_v25  ;;  %v2237_v24 = vld [vmem:[#allocation5 + $0x100] sm:$0xff]  ;;  %v2240_v25 = vld [vmem:[#allocation5 + $0x108] sm:$0xff] }
 0x1a1   :  { %811 = vmatpush.msrb.mxu0 %v2698_v26  ;;  %831 = vmatpush.msrb.mxu1 %v2699_v27  ;;  %v2243_v26 = vld [vmem:[#allocation5 + $0x110] sm:$0xff]  ;;  %v2246_v27 = vld [vmem:[#allocation5 + $0x118] sm:$0xff] }
 0x1a2   :  { %851 = vmatpush.msrb.mxu2 %v2700_v28  ;;  %871 = vmatpush.msrb.mxu3 %v2701_v29  ;;  %v2249_v28 = vld [vmem:[#allocation5 + $0xe0] sm:$0xff]  ;;  %v2252_v29 = vld [vmem:[#allocation5 + $0xe8] sm:$0xff] }
 0x1fe   :  { %v595_v30 = vpop.f32.mrf.mxu0  ;;  %v615_v31 = vpop.f32.mrf.mxu1 }
 0x1ff   :  { %v658_v33 = vadd.f32 %v595_v30, %v2702_v32  ;;  %v659_v36 = vadd.f32 %v615_v31, %v2703_v35  ;;  %v2255_v30 = vld [vmem:[#allocation5 + $0xf0] sm:$0xff]  ;;  %v2258_v31 = vld [vmem:[#allocation5 + $0xf8] sm:$0xff]  ;;  %v2261_v32 = vld [vmem:[#allocation5 + $0xc0] sm:$0xff] }
 0x200   :  { %v2267_v35 = vld [vmem:[#allocation5 + $0xd0] sm:$0xff] }
 0x201   :  { %v662_v37 = vmul.f32 0.5, %v658_v33  ;;  %v666_v38 = vmul.f32 0.5, %v659_v36  ;;  %v2264_v33 = vld [vmem:[#allocation5 + $0xc8] sm:$0xff]  ;;  %v2270_v36 = vld [vmem:[#allocation5 + $0xd8] sm:$0xff] }
 0x203   :  { %1312 = vtanh.f32 %v662_v37  ;;  %v2273_v37 = vld [vmem:[#allocation5 + $0xa0] sm:$0xff] }
 0x204   :  { %1314 = vtanh.f32 %v666_v38  ;;  %v2276_v38 = vld [vmem:[#allocation5 + $0xa8] sm:$0xff] }
 0x205   :  { %v635_v39 = vpop.f32.mrf.mxu2  ;;  %v655_v40 = vpop.f32.mrf.mxu3 }
 0x206   :  { %v660_v42 = vadd.f32 %v635_v39, %v2704_v41  ;;  %v661_v44 = vadd.f32 %v655_v40, %v2705_v43  ;;  %v2279_v39 = vld [vmem:[#allocation5 + $0xb0] sm:$0xff]  ;;  %v2282_v40 = vld [vmem:[#allocation5 + $0xb8] sm:$0xff]  ;;  %v2285_v41 = vld [vmem:[#allocation5 + $0x80] sm:$0xff] }
 0x207   :  { %2706 = vst [vmem:[#allocation11_spill] sm:$0xff] %v2285_v41  ;;  %v2291_v43 = vld [vmem:[#allocation5 + $0x90] sm:$0xff] }
 0x208   :  { %1316 = vtanh.f32 %v660_v42  ;;  %v671_v45 = vmul.f32 0.5, %v661_v44  ;;  %v2288_v42 = vld [vmem:[#allocation5 + $0x88] sm:$0xff]  ;;  %2708 = vst [vmem:[#allocation13_spill] sm:$0xff] %v2291_v43  ;;  %v2294_v44 = vld [vmem:[#allocation5 + $0x98] sm:$0xff] }
 0x209   :  { %v1313_v46 = vpop.eup %1312  ;;  %2707 = vst [vmem:[#allocation12_spill] sm:$0xff] %v2288_v42 }
 0x20a   :  { %v1315_v48 = vpop.eup %1314  ;;  %v664_v49 = vadd.f32 1.0, %v1313_v46  ;;  %1318 = vtanh.f32 %v671_v45  ;;  %2709 = vst [vmem:[#allocation14_spill] sm:$0xff] %v2294_v44  ;;  %v2297_v45 = vld [vmem:[#allocation5 + $0x60] sm:$0xff]  ;;  %v2300_v46 = vld [vmem:[#allocation5 + $0x68] sm:$0xff] }
 0x20b   :  { %v668_v50 = vadd.f32 1.0, %v1315_v48  ;;  %2710 = vst [vmem:[#allocation35_spill] sm:$0xff] %v2297_v45  ;;  %v2303_v48 = vld [vmem:[#allocation5 + $0x70] sm:$0xff] }
 0x20c   :  { %v665_v51 = vmul.f32 0.5, %v664_v49  ;;  %2711 = vst [vmem:[#allocation36_spill] sm:$0xff] %v2300_v46  ;;  %v2306_v49 = vld [vmem:[#allocation5 + $0x78] sm:$0xff] }
 0x20d   :  { %v669_v8 = vmul.f32 0.5, %v668_v50  ;;  %2712 = vst [vmem:[#allocation37_spill] sm:$0xff] %v2303_v48  ;;  %v2309_v50 = vld [vmem:[#allocation5 + $0x40] sm:$0xff] }
 0x20e   :  { %v1317_v0 = vpop.eup %1316  ;;  %2713 = vst [vmem:[#allocation38_spill] sm:$0xff] %v2306_v49 }
 0x20f   :  { %v675_v56 = vmul.f32 %v669_v8, %v2078_v52  ;;  %v676_v2 = vmul.f32 %v1317_v0, %v665_v51  ;;  %v2180_v52 = vld [vmem:[#allocation5 + $0x1a8] sm:$0xff]  ;;  %2714 = vst [vmem:[#allocation15_spill] sm:$0xff] %v2309_v50  ;;  %v2315_v8 = vld [vmem:[#allocation5 + $0x50] sm:$0xff]  ;;  %v2318_v0 = vld [vmem:[#allocation5 + $0x58] sm:$0xff] }
 0x210   :  { %v1319_v4 = vpop.eup %1318  ;;  %v2312_v51 = vld [vmem:[#allocation5 + $0x48] sm:$0xff]  ;;  %2716 = vst [vmem:[#allocation17_spill] sm:$0xff] %v2315_v8 }
 0x211   :  { %v2150_v6 = vadd.f32 %v676_v2, %v675_v56  ;;  %v673_v21 = vadd.f32 1.0, %v1319_v4  ;;  %2715 = vst [vmem:[#allocation16_spill] sm:$0xff] %v2312_v51  ;;  %v2321_v56 = vld [vmem:[#allocation5 + $0x20] sm:$0xff]  ;;  %v2324_v2 = vld [vmem:[#allocation5 + $0x28] sm:$0xff]  ;;  %v2327_v4 = vld [vmem:[#allocation5 + $0x30] sm:$0xff] }
 0x212   :  { %2717 = vst [vmem:[#allocation18_spill] sm:$0xff] %v2318_v0 }
 0x213   :  { %1320 = vtanh.f32 %v2150_v6  ;;  %v674_v57 = vmul.f32 0.5, %v673_v21  ;;  %2718 = vst [vmem:[#allocation19_spill] sm:$0xff] %v2321_v56  ;;  %v2330_v21 = vld [vmem:[#allocation5 + $0x38] sm:$0xff] }
 0x214   :  { %2719 = vst [vmem:[#allocation20_spill] sm:$0xff] %v2324_v2 }
 0x215   :  { %2720 = vst [vmem:[#allocation21_spill] sm:$0xff] %v2327_v4 }
 0x216   :  { %2721 = vst [vmem:[#allocation22_spill] sm:$0xff] %v2330_v21 }
 0x219   :  { %v1321_v55 = vpop.eup %1320 }
 0x21a   :  { %v679_v59 = vmul.f32 %v1321_v55, %v674_v57  ;;  %v2333_v57 = vld [vmem:[#allocation5] sm:$0xff]  ;;  %v2336_v55 = vld [vmem:[#allocation5 + $0x8] sm:$0xff] }
 0x21b   :  { %2722 = vst [vmem:[#allocation23_spill] sm:$0xff] %v2333_v57 }
 0x21c   :  { %703 = vmatmul.f32.vlgmr.msra.gmra.mxu0 %v679_v59  ;;  %723 = vmatmul.f32.vlgmr.msra.gmra.mxu1 %v679_v59  ;;  %2723 = vst [vmem:[#allocation24_spill] sm:$0xff] %v2336_v55 }
 0x21d   :  { %743 = vmatmul.f32.vlgmr.msra.gmra.mxu2 %v679_v59  ;;  %763 = vmatmul.f32.vlgmr.msra.gmra.mxu3 %v679_v59  ;;  %v2339_v59 = vld [vmem:[#allocation5 + $0x10] sm:$0xff] }
 0x21e   :  { %905 = vmatpush.msra.mxu0 %v2153_v3  ;;  %925 = vmatpush.msra.mxu1 %v2156_v7  ;;  %2724 = vst [vmem:[#allocation25_spill] sm:$0xff] %v2339_v59 }
 0x21f   :  { %945 = vmatpush.msra.mxu2 %v2159_v54  ;;  %965 = vmatpush.msra.mxu3 %v2162_v53 }
 0x220   :  { %906 = vmatpush.msra.mxu0 %v2165_v63  ;;  %926 = vmatpush.msra.mxu1 %v2168_v62 }
 0x221   :  { %946 = vmatpush.msra.mxu2 %v2171_v1  ;;  %966 = vmatpush.msra.mxu3 %v2174_v58 }
 0x222   :  { %907 = vmatpush.msra.mxu0 %v2177_v60  ;;  %927 = vmatpush.msra.mxu1 %v2180_v52 }
 0x223   :  { %947 = vmatpush.msra.mxu2 %v2183_v34  ;;  %967 = vmatpush.msra.mxu3 %v2186_v47 }
 0x224   :  { %908 = vmatpush.msra.mxu0 %v2189_v5  ;;  %928 = vmatpush.msra.mxu1 %v2192_v61 }
 0x225   :  { %948 = vmatpush.msra.mxu2 %v2195_v9  ;;  %968 = vmatpush.msra.mxu3 %v2198_v10 }
 0x226   :  { %909 = vmatpush.msra.mxu0 %v2201_v11  ;;  %929 = vmatpush.msra.mxu1 %v2204_v12 }
 0x227   :  { %949 = vmatpush.msra.mxu2 %v2207_v13  ;;  %969 = vmatpush.msra.mxu3 %v2210_v14 }
 0x228   :  { %910 = vmatpush.msra.mxu0 %v2213_v15  ;;  %930 = vmatpush.msra.mxu1 %v2216_v16 }
 0x229   :  { %950 = vmatpush.msra.mxu2 %v2219_v17  ;;  %970 = vmatpush.msra.mxu3 %v2222_v18 }
 0x22a   :  { %911 = vmatpush.msra.mxu0 %v2225_v19  ;;  %931 = vmatpush.msra.mxu1 %v2228_v20 }
 0x22b   :  { %951 = vmatpush.msra.mxu2 %v2231_v22  ;;  %971 = vmatpush.msra.mxu3 %v2234_v23 }
 0x22c   :  { %912 = vmatpush.msra.mxu0 %v2237_v24  ;;  %932 = vmatpush.msra.mxu1 %v2240_v25 }
 0x22d   :  { %952 = vmatpush.msra.mxu2 %v2243_v26  ;;  %972 = vmatpush.msra.mxu3 %v2246_v27 }
 0x22e   :  { %913 = vmatpush.msra.mxu0 %v2249_v28  ;;  %933 = vmatpush.msra.mxu1 %v2252_v29 }
 0x22f   :  { %953 = vmatpush.msra.mxu2 %v2255_v30  ;;  %973 = vmatpush.msra.mxu3 %v2258_v31 }
 0x230   :  { %914 = vmatpush.msra.mxu0 %v2261_v32  ;;  %934 = vmatpush.msra.mxu1 %v2264_v33 }
 0x231   :  { %954 = vmatpush.msra.mxu2 %v2267_v35  ;;  %974 = vmatpush.msra.mxu3 %v2270_v36 }
 0x232   :  { %915 = vmatpush.msra.mxu0 %v2273_v37  ;;  %935 = vmatpush.msra.mxu1 %v2276_v38 }
 0x233   :  { %955 = vmatpush.msra.mxu2 %v2279_v39  ;;  %975 = vmatpush.msra.mxu3 %v2282_v40 }
 0x234   :  { %916 = vmatpush.msra.mxu0 %v2285_v41  ;;  %936 = vmatpush.msra.mxu1 %v2288_v42 }
 0x235   :  { %956 = vmatpush.msra.mxu2 %v2291_v43  ;;  %976 = vmatpush.msra.mxu3 %v2294_v44 }
 0x236   :  { %917 = vmatpush.msra.mxu0 %v2297_v45  ;;  %937 = vmatpush.msra.mxu1 %v2300_v46  ;;  %v2729_v45 = vld [vmem:[#allocation46_spill] sm:$0xff] }
 0x237   :  { %957 = vmatpush.msra.mxu2 %v2303_v48  ;;  %977 = vmatpush.msra.mxu3 %v2306_v49  ;;  %v2728_v48 = vld [vmem:[#allocation45_spill] sm:$0xff] }
 0x238   :  { %918 = vmatpush.msra.mxu0 %v2309_v50  ;;  %938 = vmatpush.msra.mxu1 %v2312_v51 }
 0x239   :  { %958 = vmatpush.msra.mxu2 %v2315_v8  ;;  %978 = vmatpush.msra.mxu3 %v2318_v0  ;;  %v2726_v0 = vld [vmem:[#allocation43_spill] sm:$0xff]  ;;  %v2727_v8 = vld [vmem:[#allocation44_spill] sm:$0xff] }
 0x23a   :  { %919 = vmatpush.msra.mxu0 %v2321_v56  ;;  %939 = vmatpush.msra.mxu1 %v2324_v2  ;;  %v2342_v2 = vld [vmem:[#allocation5 + $0x18] sm:$0xff] }
 0x23b   :  { %959 = vmatpush.msra.mxu2 %v2327_v4  ;;  %979 = vmatpush.msra.mxu3 %v2330_v21  ;;  %2725 = vst [vmem:[#allocation26_spill] sm:$0xff] %v2342_v2 }
 0x23c   :  { %920 = vmatpush.msra.mxu0 %v2333_v57  ;;  %940 = vmatpush.msra.mxu1 %v2336_v55 }
 0x23d   :  { %960 = vmatpush.msra.mxu2 %v2339_v59  ;;  %980 = vmatpush.msra.mxu3 %v2342_v2 }
 0x299   :  { %v704_v4 = vpop.f32.mrf.mxu0  ;;  %v724_v56 = vpop.f32.mrf.mxu1 }
 0x29a   :  { %v767_v21 = vadd.f32 %v704_v4, %v2726_v0  ;;  %v768_v51 = vadd.f32 %v724_v56, %v2727_v8 }
 0x29c   :  { %v771_v50 = vmul.f32 0.5, %v767_v21  ;;  %v775_v57 = vmul.f32 0.5, %v768_v51 }
 0x29e   :  { %1322 = vtanh.f32 %v771_v50 }
 0x29f   :  { %1324 = vtanh.f32 %v775_v57  ;;  %v2736_v57 = vld [vmem:[#allocation37_spill] sm:$0xff] }
 0x2a0   :  { %v744_v49 = vpop.f32.mrf.mxu2  ;;  %v764_v55 = vpop.f32.mrf.mxu3 }
 0x2a1   :  { %v769_v46 = vadd.f32 %v744_v49, %v2728_v48  ;;  %v770_v59 = vadd.f32 %v764_v55, %v2729_v45  ;;  %v2737_v55 = vld [vmem:[#allocation38_spill] sm:$0xff] }
 0x2a3   :  { %1326 = vtanh.f32 %v769_v46  ;;  %v780_v44 = vmul.f32 0.5, %v770_v59  ;;  %v2738_v59 = vld [vmem:[#allocation15_spill] sm:$0xff] }
 0x2a4   :  { %v1323_v43 = vpop.eup %1322 }
 0x2a5   :  { %v1325_v2 = vpop.eup %1324  ;;  %v773_v42 = vadd.f32 1.0, %v1323_v43  ;;  %1328 = vtanh.f32 %v780_v44  ;;  %v2733_v43 = vld [vmem:[#allocation14_spill] sm:$0xff]  ;;  %v2734_v44 = vld [vmem:[#allocation35_spill] sm:$0xff] }
 0x2a6   :  { %v777_v41 = vadd.f32 1.0, %v1325_v2  ;;  %v2735_v2 = vld [vmem:[#allocation36_spill] sm:$0xff] }
 0x2a7   :  { %v774_v0 = vmul.f32 0.5, %v773_v42  ;;  %v2732_v42 = vld [vmem:[#allocation13_spill] sm:$0xff] }
 0x2a8   :  { %v778_v4 = vmul.f32 0.5, %v777_v41  ;;  %v2731_v41 = vld [vmem:[#allocation12_spill] sm:$0xff] }
 0x2a9   :  { %v1327_v8 = vpop.eup %1326 }
 0x2aa   :  { %v784_v51 = vmul.f32 %v778_v4, %v2150_v6  ;;  %v785_v50 = vmul.f32 %v1327_v8, %v774_v0  ;;  %v2730_v6 = vld [vmem:[#allocation11_spill] sm:$0xff]  ;;  %v2739_v0 = vld [vmem:[#allocation16_spill] sm:$0xff]  ;;  %v2740_v4 = vld [vmem:[#allocation17_spill] sm:$0xff] }
 0x2ab   :  { %v1329_v56 = vpop.eup %1328  ;;  %v2741_v8 = vld [vmem:[#allocation18_spill] sm:$0xff] }
 0x2ac   :  { %v2350_v21 = vadd.f32 %v785_v50, %v784_v51  ;;  %v782_v48 = vadd.f32 1.0, %v1329_v56  ;;  %v2742_v51 = vld [vmem:[#allocation19_spill] sm:$0xff]  ;;  %v2743_v50 = vld [vmem:[#allocation20_spill] sm:$0xff]  ;;  %v2744_v56 = vld [vmem:[#allocation21_spill] sm:$0xff] }
 0x2ae   :  { %1330 = vtanh.f32 %v2350_v21  ;;  %v783_v45 = vmul.f32 0.5, %v782_v48  ;;  %v2745_v48 = vld [vmem:[#allocation22_spill] sm:$0xff] }
 0x2b4   :  { %v1331_v46 = vpop.eup %1330 }
 0x2b5   :  { %v788_v49 = vmul.f32 %v1331_v46, %v783_v45  ;;  %v2746_v45 = vld [vmem:[#allocation23_spill] sm:$0xff]  ;;  %v2747_v46 = vld [vmem:[#allocation24_spill] sm:$0xff] }
 0x2b7   :  { %812 = vmatmul.f32.vlgmr.msrb.gmra.mxu0 %v788_v49  ;;  %832 = vmatmul.f32.vlgmr.msrb.gmra.mxu1 %v788_v49 }
 0x2b8   :  { %852 = vmatmul.f32.vlgmr.msrb.gmra.mxu2 %v788_v49  ;;  %872 = vmatmul.f32.vlgmr.msrb.gmra.mxu3 %v788_v49  ;;  %v2748_v49 = vld [vmem:[#allocation25_spill] sm:$0xff] }
 0x2b9   :  { %1014 = vmatpush.msrb.mxu0 %v2153_v3  ;;  %1034 = vmatpush.msrb.mxu1 %v2156_v7 }
 0x2ba   :  { %1054 = vmatpush.msrb.mxu2 %v2159_v54  ;;  %1074 = vmatpush.msrb.mxu3 %v2162_v53 }
 0x2bb   :  { %1015 = vmatpush.msrb.mxu0 %v2165_v63  ;;  %1035 = vmatpush.msrb.mxu1 %v2168_v62 }
 0x2bc   :  { %1055 = vmatpush.msrb.mxu2 %v2171_v1  ;;  %1075 = vmatpush.msrb.mxu3 %v2174_v58 }
 0x2bd   :  { %1016 = vmatpush.msrb.mxu0 %v2177_v60  ;;  %1036 = vmatpush.msrb.mxu1 %v2180_v52 }
 0x2be   :  { %1056 = vmatpush.msrb.mxu2 %v2183_v34  ;;  %1076 = vmatpush.msrb.mxu3 %v2186_v47 }
 0x2bf   :  { %1017 = vmatpush.msrb.mxu0 %v2189_v5  ;;  %1037 = vmatpush.msrb.mxu1 %v2192_v61 }
 0x2c0   :  { %1057 = vmatpush.msrb.mxu2 %v2195_v9  ;;  %1077 = vmatpush.msrb.mxu3 %v2198_v10 }
 0x2c1   :  { %1018 = vmatpush.msrb.mxu0 %v2201_v11  ;;  %1038 = vmatpush.msrb.mxu1 %v2204_v12 }
 0x2c2   :  { %1058 = vmatpush.msrb.mxu2 %v2207_v13  ;;  %1078 = vmatpush.msrb.mxu3 %v2210_v14 }
 0x2c3   :  { %1019 = vmatpush.msrb.mxu0 %v2213_v15  ;;  %1039 = vmatpush.msrb.mxu1 %v2216_v16 }
 0x2c4   :  { %1059 = vmatpush.msrb.mxu2 %v2219_v17  ;;  %1079 = vmatpush.msrb.mxu3 %v2222_v18 }
 0x2c5   :  { %1020 = vmatpush.msrb.mxu0 %v2225_v19  ;;  %1040 = vmatpush.msrb.mxu1 %v2228_v20 }
 0x2c6   :  { %1060 = vmatpush.msrb.mxu2 %v2231_v22  ;;  %1080 = vmatpush.msrb.mxu3 %v2234_v23 }
 0x2c7   :  { %1021 = vmatpush.msrb.mxu0 %v2237_v24  ;;  %1041 = vmatpush.msrb.mxu1 %v2240_v25 }
 0x2c8   :  { %1061 = vmatpush.msrb.mxu2 %v2243_v26  ;;  %1081 = vmatpush.msrb.mxu3 %v2246_v27 }
 0x2c9   :  { %1022 = vmatpush.msrb.mxu0 %v2249_v28  ;;  %1042 = vmatpush.msrb.mxu1 %v2252_v29 }
 0x2ca   :  { %1062 = vmatpush.msrb.mxu2 %v2255_v30  ;;  %1082 = vmatpush.msrb.mxu3 %v2258_v31 }
 0x2cb   :  { %1023 = vmatpush.msrb.mxu0 %v2261_v32  ;;  %1043 = vmatpush.msrb.mxu1 %v2264_v33 }
 0x2cc   :  { %1063 = vmatpush.msrb.mxu2 %v2267_v35  ;;  %1083 = vmatpush.msrb.mxu3 %v2270_v36 }
 0x2cd   :  { %1024 = vmatpush.msrb.mxu0 %v2273_v37  ;;  %1044 = vmatpush.msrb.mxu1 %v2276_v38 }
 0x2ce   :  { %1064 = vmatpush.msrb.mxu2 %v2279_v39  ;;  %1084 = vmatpush.msrb.mxu3 %v2282_v40 }
 0x2cf   :  { %1025 = vmatpush.msrb.mxu0 %v2730_v6  ;;  %1045 = vmatpush.msrb.mxu1 %v2731_v41 }
 0x2d0   :  { %1065 = vmatpush.msrb.mxu2 %v2732_v42  ;;  %1085 = vmatpush.msrb.mxu3 %v2733_v43  ;;  %v2753_v43 = vld [vmem:[#allocation50_spill] sm:$0xff] }
 0x2d1   :  { %1026 = vmatpush.msrb.mxu0 %v2734_v44  ;;  %1046 = vmatpush.msrb.mxu1 %v2735_v2  ;;  %v2752_v44 = vld [vmem:[#allocation49_spill] sm:$0xff] }
 0x2d2   :  { %1066 = vmatpush.msrb.mxu2 %v2736_v57  ;;  %1086 = vmatpush.msrb.mxu3 %v2737_v55  ;;  %v2750_v55 = vld [vmem:[#allocation47_spill] sm:$0xff]  ;;  %v2751_v57 = vld [vmem:[#allocation48_spill] sm:$0xff] }
 0x2d3   :  { %1027 = vmatpush.msrb.mxu0 %v2738_v59  ;;  %1047 = vmatpush.msrb.mxu1 %v2739_v0  ;;  %v2749_v59 = vld [vmem:[#allocation26_spill] sm:$0xff] }
 0x2d4   :  { %1067 = vmatpush.msrb.mxu2 %v2740_v4  ;;  %1087 = vmatpush.msrb.mxu3 %v2741_v8 }
 0x2d5   :  { %1028 = vmatpush.msrb.mxu0 %v2742_v51  ;;  %1048 = vmatpush.msrb.mxu1 %v2743_v50 }
 0x2d6   :  { %1068 = vmatpush.msrb.mxu2 %v2744_v56  ;;  %1088 = vmatpush.msrb.mxu3 %v2745_v48 }
 0x2d7   :  { %1029 = vmatpush.msrb.mxu0 %v2746_v45  ;;  %1049 = vmatpush.msrb.mxu1 %v2747_v46 }
 0x2d8   :  { %1069 = vmatpush.msrb.mxu2 %v2748_v49  ;;  %1089 = vmatpush.msrb.mxu3 %v2749_v59 }
 0x334   :  { %v813_v0 = vpop.f32.mrf.mxu0  ;;  %v833_v4 = vpop.f32.mrf.mxu1 }
 0x335   :  { %v876_v8 = vadd.f32 %v813_v0, %v2750_v55  ;;  %v877_v51 = vadd.f32 %v833_v4, %v2751_v57 }
 0x337   :  { %v880_v2 = vmul.f32 0.5, %v876_v8  ;;  %v884_v50 = vmul.f32 0.5, %v877_v51 }
 0x339   :  { %1332 = vtanh.f32 %v880_v2 }
 0x33a   :  { %1334 = vtanh.f32 %v884_v50 }
 0x33b   :  { %v853_v56 = vpop.f32.mrf.mxu2  ;;  %v873_v48 = vpop.f32.mrf.mxu3 }
 0x33c   :  { %v878_v45 = vadd.f32 %v853_v56, %v2752_v44  ;;  %v879_v46 = vadd.f32 %v873_v48, %v2753_v43 }
 0x33e   :  { %1336 = vtanh.f32 %v878_v45  ;;  %v889_v49 = vmul.f32 0.5, %v879_v46 }
 0x33f   :  { %v1333_v42 = vpop.eup %1332 }
 0x340   :  { %v1335_v59 = vpop.eup %1334  ;;  %v882_v41 = vadd.f32 1.0, %v1333_v42  ;;  %1338 = vtanh.f32 %v889_v49  ;;  %v2778_v49 = vld [vmem:[#allocation55_spill] sm:$0xff] }
 0x341   :  { %v886_v6 = vadd.f32 1.0, %v1335_v59 }
 0x342   :  { %v883_v55 = vmul.f32 0.5, %v882_v41 }
 0x343   :  { %v887_v0 = vmul.f32 0.5, %v886_v6 }
 0x344   :  { %v1337_v57 = vpop.eup %1336 }
 0x345   :  { %v893_v4 = vmul.f32 %v887_v0, %v2350_v21  ;;  %v894_v2 = vmul.f32 %v1337_v57, %v883_v55  ;;  %v2779_v0 = vld [vmem:[#allocation56_spill] sm:$0xff] }
 0x346   :  { %v1339_v8 = vpop.eup %1338 }
 0x347   :  { %v2422_v51 = vadd.f32 %v894_v2, %v893_v4  ;;  %v891_v44 = vadd.f32 1.0, %v1339_v8 }
 0x349   :  { %1340 = vtanh.f32 %v2422_v51  ;;  %v892_v43 = vmul.f32 0.5, %v891_v44  ;;  %v2780_v44 = vld [vmem:[#allocation57_spill] sm:$0xff] }
 0x34f   :  { %v1341_v50 = vpop.eup %1340 }
 0x350   :  { %v897_v56 = vmul.f32 %v1341_v50, %v892_v43  ;;  %v2781_v50 = vld [vmem:[#allocation58_spill] sm:$0xff] }
 0x352   :  { %921 = vmatmul.f32.vlgmr.msra.gmra.mxu0 %v897_v56  ;;  %941 = vmatmul.f32.vlgmr.msra.gmra.mxu1 %v897_v56 }
 0x353   :  { %961 = vmatmul.f32.vlgmr.msra.gmra.mxu2 %v897_v56  ;;  %981 = vmatmul.f32.vlgmr.msra.gmra.mxu3 %v897_v56 }
 0x354   :  { %1123 = vmatpush.msra.mxu0 %v2153_v3  ;;  %1143 = vmatpush.msra.mxu1 %v2156_v7  ;;  %v2754_v3 = vld [vmem:[#allocation11_spill] sm:$0xff]  ;;  %v2755_v7 = vld [vmem:[#allocation12_spill] sm:$0xff] }
 0x355   :  { %1163 = vmatpush.msra.mxu2 %v2159_v54  ;;  %1183 = vmatpush.msra.mxu3 %v2162_v53  ;;  %v2756_v54 = vld [vmem:[#allocation13_spill] sm:$0xff]  ;;  %v2757_v53 = vld [vmem:[#allocation14_spill] sm:$0xff] }
 0x356   :  { %1124 = vmatpush.msra.mxu0 %v2165_v63  ;;  %1144 = vmatpush.msra.mxu1 %v2168_v62  ;;  %v2758_v63 = vld [vmem:[#allocation35_spill] sm:$0xff]  ;;  %v2759_v62 = vld [vmem:[#allocation36_spill] sm:$0xff] }
 0x357   :  { %1164 = vmatpush.msra.mxu2 %v2171_v1  ;;  %1184 = vmatpush.msra.mxu3 %v2174_v58  ;;  %v2760_v1 = vld [vmem:[#allocation37_spill] sm:$0xff]  ;;  %v2761_v58 = vld [vmem:[#allocation38_spill] sm:$0xff] }
 0x358   :  { %1125 = vmatpush.msra.mxu0 %v2177_v60  ;;  %1145 = vmatpush.msra.mxu1 %v2180_v52  ;;  %v2762_v60 = vld [vmem:[#allocation15_spill] sm:$0xff]  ;;  %v2763_v52 = vld [vmem:[#allocation16_spill] sm:$0xff] }
 0x359   :  { %1165 = vmatpush.msra.mxu2 %v2183_v34  ;;  %1185 = vmatpush.msra.mxu3 %v2186_v47  ;;  %v2764_v34 = vld [vmem:[#allocation17_spill] sm:$0xff]  ;;  %v2765_v47 = vld [vmem:[#allocation18_spill] sm:$0xff] }
 0x35a   :  { %1126 = vmatpush.msra.mxu0 %v2189_v5  ;;  %1146 = vmatpush.msra.mxu1 %v2192_v61  ;;  %v2766_v5 = vld [vmem:[#allocation19_spill] sm:$0xff]  ;;  %v2767_v61 = vld [vmem:[#allocation20_spill] sm:$0xff] }
 0x35b   :  { %1166 = vmatpush.msra.mxu2 %v2195_v9  ;;  %1186 = vmatpush.msra.mxu3 %v2198_v10  ;;  %v2768_v9 = vld [vmem:[#allocation21_spill] sm:$0xff]  ;;  %v2769_v10 = vld [vmem:[#allocation22_spill] sm:$0xff] }
 0x35c   :  { %1127 = vmatpush.msra.mxu0 %v2201_v11  ;;  %1147 = vmatpush.msra.mxu1 %v2204_v12  ;;  %v2770_v11 = vld [vmem:[#allocation23_spill] sm:$0xff]  ;;  %v2771_v12 = vld [vmem:[#allocation24_spill] sm:$0xff] }
 0x35d   :  { %1167 = vmatpush.msra.mxu2 %v2207_v13  ;;  %1187 = vmatpush.msra.mxu3 %v2210_v14  ;;  %v2772_v13 = vld [vmem:[#allocation25_spill] sm:$0xff]  ;;  %v2773_v14 = vld [vmem:[#allocation26_spill] sm:$0xff] }
 0x35e   :  { %1128 = vmatpush.msra.mxu0 %v2213_v15  ;;  %1148 = vmatpush.msra.mxu1 %v2216_v16 }
 0x35f   :  { %1168 = vmatpush.msra.mxu2 %v2219_v17  ;;  %1188 = vmatpush.msra.mxu3 %v2222_v18  ;;  %v2774_v17 = vld [vmem:[#allocation51_spill] sm:$0xff] }
 0x360   :  { %1129 = vmatpush.msra.mxu0 %v2225_v19  ;;  %1149 = vmatpush.msra.mxu1 %v2228_v20  ;;  %v2775_v19 = vld [vmem:[#allocation52_spill] sm:$0xff] }
 0x361   :  { %1169 = vmatpush.msra.mxu2 %v2231_v22  ;;  %1189 = vmatpush.msra.mxu3 %v2234_v23 }
 0x362   :  { %1130 = vmatpush.msra.mxu0 %v2237_v24  ;;  %1150 = vmatpush.msra.mxu1 %v2240_v25 }
 0x363   :  { %1170 = vmatpush.msra.mxu2 %v2243_v26  ;;  %1190 = vmatpush.msra.mxu3 %v2246_v27  ;;  %v2776_v26 = vld [vmem:[#allocation53_spill] sm:$0xff] }
 0x364   :  { %1131 = vmatpush.msra.mxu0 %v2249_v28  ;;  %1151 = vmatpush.msra.mxu1 %v2252_v29  ;;  %v2777_v28 = vld [vmem:[#allocation54_spill] sm:$0xff] }
 0x365   :  { %1171 = vmatpush.msra.mxu2 %v2255_v30  ;;  %1191 = vmatpush.msra.mxu3 %v2258_v31 }
 0x366   :  { %1132 = vmatpush.msra.mxu0 %v2261_v32  ;;  %1152 = vmatpush.msra.mxu1 %v2264_v33 }
 0x367   :  { %1172 = vmatpush.msra.mxu2 %v2267_v35  ;;  %1192 = vmatpush.msra.mxu3 %v2270_v36 }
 0x368   :  { %1133 = vmatpush.msra.mxu0 %v2273_v37  ;;  %1153 = vmatpush.msra.mxu1 %v2276_v38 }
 0x369   :  { %1173 = vmatpush.msra.mxu2 %v2279_v39  ;;  %1193 = vmatpush.msra.mxu3 %v2282_v40 }
 0x36a   :  { %1134 = vmatpush.msra.mxu0 %v2754_v3  ;;  %1154 = vmatpush.msra.mxu1 %v2755_v7 }
 0x36b   :  { %1174 = vmatpush.msra.mxu2 %v2756_v54  ;;  %1194 = vmatpush.msra.mxu3 %v2757_v53 }
 0x36c   :  { %1135 = vmatpush.msra.mxu0 %v2758_v63  ;;  %1155 = vmatpush.msra.mxu1 %v2759_v62 }
 0x36d   :  { %1175 = vmatpush.msra.mxu2 %v2760_v1  ;;  %1195 = vmatpush.msra.mxu3 %v2761_v58 }
 0x36e   :  { %1136 = vmatpush.msra.mxu0 %v2762_v60  ;;  %1156 = vmatpush.msra.mxu1 %v2763_v52 }
 0x36f   :  { %1176 = vmatpush.msra.mxu2 %v2764_v34  ;;  %1196 = vmatpush.msra.mxu3 %v2765_v47 }
 0x370   :  { %1137 = vmatpush.msra.mxu0 %v2766_v5  ;;  %1157 = vmatpush.msra.mxu1 %v2767_v61 }
 0x371   :  { %1177 = vmatpush.msra.mxu2 %v2768_v9  ;;  %1197 = vmatpush.msra.mxu3 %v2769_v10 }
 0x372   :  { %1138 = vmatpush.msra.mxu0 %v2770_v11  ;;  %1158 = vmatpush.msra.mxu1 %v2771_v12 }
 0x373   :  { %1178 = vmatpush.msra.mxu2 %v2772_v13  ;;  %1198 = vmatpush.msra.mxu3 %v2773_v14  ;;  %v2782_v13 = vld [vmem:[#allocation59_spill] sm:$0xff] }
 0x3cf   :  { %v922_v15 = vpop.f32.mrf.mxu0  ;;  %v942_v16 = vpop.f32.mrf.mxu1 }
 0x3d0   :  { %v985_v18 = vadd.f32 %v922_v15, %v2774_v17  ;;  %v986_v20 = vadd.f32 %v942_v16, %v2775_v19  ;;  %v2783_v15 = vld [vmem:[#allocation60_spill] sm:$0xff] }
 0x3d2   :  { %v989_v22 = vmul.f32 0.5, %v985_v18  ;;  %v993_v23 = vmul.f32 0.5, %v986_v20 }
 0x3d4   :  { %1342 = vtanh.f32 %v989_v22  ;;  %v2784_v22 = vld [vmem:[#allocation61_spill] sm:$0xff] }
 0x3d5   :  { %1344 = vtanh.f32 %v993_v23 }
 0x3d6   :  { %v962_v24 = vpop.f32.mrf.mxu2  ;;  %v982_v25 = vpop.f32.mrf.mxu3 }
 0x3d7   :  { %v987_v27 = vadd.f32 %v962_v24, %v2776_v26  ;;  %v988_v29 = vadd.f32 %v982_v25, %v2777_v28  ;;  %v2785_v24 = vld [vmem:[#allocation62_spill] sm:$0xff] }
 0x3d9   :  { %1346 = vtanh.f32 %v987_v27  ;;  %v998_v30 = vmul.f32 0.5, %v988_v29 }
 0x3da   :  { %v1343_v31 = vpop.eup %1342 }
 0x3db   :  { %v1345_v32 = vpop.eup %1344  ;;  %v991_v33 = vadd.f32 1.0, %v1343_v31  ;;  %1348 = vtanh.f32 %v998_v30 }
 0x3dc   :  { %v995_v35 = vadd.f32 1.0, %v1345_v32 }
 0x3dd   :  { %v992_v36 = vmul.f32 0.5, %v991_v33 }
 0x3de   :  { %v996_v37 = vmul.f32 0.5, %v995_v35 }
 0x3df   :  { %v1347_v38 = vpop.eup %1346 }
 0x3e0   :  { %v1002_v39 = vmul.f32 %v996_v37, %v2422_v51  ;;  %v1003_v40 = vmul.f32 %v1347_v38, %v992_v36 }
 0x3e1   :  { %v1349_v21 = vpop.eup %1348 }
 0x3e2   :  { %v1004_v6 = vadd.f32 %v1003_v40, %v1002_v39  ;;  %v1000_v41 = vadd.f32 1.0, %v1349_v21 }
 0x3e4   :  { %1350 = vtanh.f32 %v1004_v6  ;;  %v1001_v42 = vmul.f32 0.5, %v1000_v41 }
 0x3ea   :  { %v1351_v59 = vpop.eup %1350 }
 0x3eb   :  { %v1006_v48 = vmul.f32 %v1351_v59, %v1001_v42 }
 0x3ed   :  { %1030 = vmatmul.f32.vlgmr.msrb.gmra.mxu0 %v1006_v48  ;;  %1050 = vmatmul.f32.vlgmr.msrb.gmra.mxu1 %v1006_v48 }
 0x3ee   :  { %1070 = vmatmul.f32.vlgmr.msrb.gmra.mxu2 %v1006_v48  ;;  %1090 = vmatmul.f32.vlgmr.msrb.gmra.mxu3 %v1006_v48 }
 0x46a   :  { %v1031_v45 = vpop.f32.mrf.mxu0  ;;  %v1051_v46 = vpop.f32.mrf.mxu1 }
 0x46b   :  { %v1094_v55 = vadd.f32 %v1031_v45, %v2778_v49  ;;  %v1095_v57 = vadd.f32 %v1051_v46, %v2779_v0 }
 0x46d   :  { %v1098_v4 = vmul.f32 0.5, %v1094_v55  ;;  %v1102_v2 = vmul.f32 0.5, %v1095_v57 }
 0x46f   :  { %1352 = vtanh.f32 %v1098_v4 }
 0x470   :  { %1354 = vtanh.f32 %v1102_v2 }
 0x471   :  { %v1071_v8 = vpop.f32.mrf.mxu2  ;;  %v1091_v51 = vpop.f32.mrf.mxu3 }
 0x472   :  { %v1096_v43 = vadd.f32 %v1071_v8, %v2780_v44  ;;  %v1097_v56 = vadd.f32 %v1091_v51, %v2781_v50 }
 0x474   :  { %1356 = vtanh.f32 %v1096_v43  ;;  %v1107_v3 = vmul.f32 0.5, %v1097_v56 }
 0x475   :  { %v1353_v7 = vpop.eup %1352 }
 0x476   :  { %v1355_v54 = vpop.eup %1354  ;;  %v1100_v53 = vadd.f32 1.0, %v1353_v7  ;;  %1358 = vtanh.f32 %v1107_v3 }
 0x477   :  { %v1104_v63 = vadd.f32 1.0, %v1355_v54 }
 0x478   :  { %v1101_v62 = vmul.f32 0.5, %v1100_v53 }
 0x479   :  { %v1105_v1 = vmul.f32 0.5, %v1104_v63 }
 0x47a   :  { %v1357_v58 = vpop.eup %1356 }
 0x47b   :  { %v1111_v60 = vmul.f32 %v1105_v1, %v1004_v6  ;;  %v1112_v52 = vmul.f32 %v1357_v58, %v1101_v62 }
 0x47c   :  { %v1359_v34 = vpop.eup %1358 }
 0x47d   :  { %v1113_v47 = vadd.f32 %v1112_v52, %v1111_v60  ;;  %v1109_v5 = vadd.f32 1.0, %v1359_v34 }
 0x47f   :  { %1360 = vtanh.f32 %v1113_v47  ;;  %v1110_v61 = vmul.f32 0.5, %v1109_v5 }
 0x485   :  { %v1361_v9 = vpop.eup %1360 }
 0x486   :  { %v1115_v10 = vmul.f32 %v1361_v9, %v1110_v61 }
 0x488   :  { %1139 = vmatmul.f32.vlgmr.msra.gmra.mxu0 %v1115_v10  ;;  %1159 = vmatmul.f32.vlgmr.msra.gmra.mxu1 %v1115_v10 }
 0x489   :  { %1179 = vmatmul.f32.vlgmr.msra.gmra.mxu2 %v1115_v10  ;;  %1199 = vmatmul.f32.vlgmr.msra.gmra.mxu3 %v1115_v10 }
 0x505   :  { %v1140_v11 = vpop.f32.mrf.mxu0  ;;  %v1160_v12 = vpop.f32.mrf.mxu1 }
 0x506   :  { %v1203_v14 = vadd.f32 %v1140_v11, %v2782_v13  ;;  %v1204_v16 = vadd.f32 %v1160_v12, %v2783_v15 }
 0x508   :  { %v1207_v17 = vmul.f32 0.5, %v1203_v14  ;;  %v1211_v18 = vmul.f32 0.5, %v1204_v16 }
 0x50a   :  { %1362 = vtanh.f32 %v1207_v17 }
 0x50b   :  { %1364 = vtanh.f32 %v1211_v18 }
 0x50c   :  { %v1180_v19 = vpop.f32.mrf.mxu2  ;;  %v1200_v20 = vpop.f32.mrf.mxu3 }
 0x50d   :  { %v1205_v23 = vadd.f32 %v1180_v19, %v2784_v22  ;;  %v1206_v25 = vadd.f32 %v1200_v20, %v2785_v24 }
 0x50f   :  { %1366 = vtanh.f32 %v1205_v23  ;;  %v1216_v26 = vmul.f32 0.5, %v1206_v25 }
 0x510   :  { %v1363_v27 = vpop.eup %1362 }
 0x511   :  { %v1365_v28 = vpop.eup %1364  ;;  %v1209_v29 = vadd.f32 1.0, %v1363_v27  ;;  %1368 = vtanh.f32 %v1216_v26 }
 0x512   :  { %v1213_v30 = vadd.f32 1.0, %v1365_v28 }
 0x513   :  { %v1210_v31 = vmul.f32 0.5, %v1209_v29 }
 0x514   :  { %v1214_v32 = vmul.f32 0.5, %v1213_v30 }
 0x515   :  { %v1367_v33 = vpop.eup %1366 }
 0x516   :  { %v1220_v35 = vmul.f32 %v1214_v32, %v1113_v47  ;;  %v1221_v36 = vmul.f32 %v1367_v33, %v1210_v31 }
 0x517   :  { %v1369_v37 = vpop.eup %1368 }
 0x518   :  { %v1222_v38 = vadd.f32 %v1221_v36, %v1220_v35  ;;  %v1218_v39 = vadd.f32 1.0, %v1369_v37 }
 0x51a   :  { %1370 = vtanh.f32 %v1222_v38  ;;  %v1219_v40 = vmul.f32 0.5, %v1218_v39 }
 0x520   :  { %v1371_v21 = vpop.eup %1370 }
 0x521   :  { %v1224_v6 = vmul.f32 %v1371_v21, %v1219_v40 }
 0x523   :  { %1230 = vst [vmem:[#allocation8] sm:$0xff] %v1224_v6 }
 0x524   :  { %1241 = dma.vmem_to_hbm [thread:$0]  %s1237_s27, 128, %s1239_s29, [#allocation7]  }
 0x525   :  { %1486 = dma.done.wait [#allocation7], 128  }
 0x526   :  { %1487 = vsyncadd [#allocation7], 4294967168 }
 0x527   :  { %1246 = vsyncpa [#allocation6], 1 }
 0x528   :  { %1247 = vsyncpa [#allocation7], 1 }

</bundles_post_ra>
